<compile_context>
chip_gen: v5e
topology: v5e:2x2
jax: 0.10.0
libtpu: 0.0.40
codegen_flags: <defaults>
</compile_context>

<pallas_src>
import functools
import math

import jax
import jax.numpy as jnp
from jax import lax
from jax.experimental import pallas as pl
from jax.experimental.pallas import tpu as pltpu


# ----------------------------- helpers --------------------------------------

def _layer_norm(x, gamma, beta, eps=1e-5):
    mu = jnp.mean(x, axis=-1, keepdims=True)
    var = jnp.mean((x - mu) ** 2, axis=-1, keepdims=True)
    return (x - mu) * lax.rsqrt(var + eps) * gamma + beta


# ----------------------------- fused kernel ---------------------------------

def _encoder_kernel(x_ref, wall_ref, wfc_ref, g_ref, b_ref,
                    out_ref, attn_ref, stacked_ref, *, n_heads, d_h, batch):
    f32 = jnp.float32
    nh = n_heads
    nhd = nh * d_h

    g = g_ref[...]                                   # (1, H)
    bb = b_ref[...]                                  # (1, H)
    w_all = wall_ref[...]                            # (3*nh*d_h, H)
    wfc = wfc_ref[...]                               # (H, H)

    # B is tiny & static -> unrolled loop; no grid means no per-step overhead.
    for b in range(batch):
        x = x_ref[b]                                 # (S, H)
        S = x.shape[0]

        # ---- one stacked projection matmul (replaces 3*nh tiny matmuls) ----
        # P[k, s] = sum_f w_all[k, f] * x[s, f]
        p = lax.dot_general(w_all, x, (((1,), (1,)), ((), ())),
                            preferred_element_type=f32)          # (3*nh*d_h, S)
        # Leading-dim-only reshapes (sublane split at tile boundary; layout-free).
        s1 = p[0 * nhd:1 * nhd].reshape(nh, d_h, S)   # scores_VV  [h, d, s]
        v_t = p[1 * nhd:2 * nhd].reshape(nh, d_h, S)  # V^T        [h, e, s]
        s2t = p[2 * nhd:3 * nhd].reshape(nh, d_h, S)  # scores_VV2 [h, d, s] (== scores2[h,s,d])

        # ---- softmaxes (exact divide; attn1 is returned to the user) -------
        e1 = jnp.exp(s1 - jnp.max(s1, axis=-1, keepdims=True))
        attn1 = e1 / jnp.sum(e1, axis=-1, keepdims=True)          # (nh, d_h, S)
        attn_ref[b] = attn1.astype(attn_ref.dtype)

        e2 = jnp.exp(s2t - jnp.max(s2t, axis=1, keepdims=True))   # softmax over d
        attn2t = e2 / jnp.sum(e2, axis=1, keepdims=True)          # (nh, d_h, S)

        # ---- double-attention core: two head-batched MXU matmuls -----------
        # vv_t[h, e, d] = sum_s v_t[h, e, s] * attn1[h, d, s]   (== VV[h, d, e])
        vv_t = lax.dot_general(v_t, attn1, (((2,), (2,)), ((0,), (0,))),
                               preferred_element_type=f32)        # (nh, d_h, d_h)
        # vvv_t[h, e, s] = sum_d vv_t[h, e, d] * attn2t[h, d, s] (== VVV[h, s, e])
        vvv_t = lax.dot_general(vv_t, attn2t, (((2,), (1,)), ((0,), (0,))),
                                preferred_element_type=f32)       # (nh, d_h, S)

        # ---- PyTorch's reshape(B, -1, H) of (nh, S, d_h) --------------------
        # stacked[h*S + s, e] = VVV[h, s, e]; the flatten then reads row
        # r*n_blk + j for output element [r, j*d_h + e]  -> strided pl.ds reads.
        for h in range(nh):                          # tiny layout plumbing only
            stacked_ref[h * S:(h + 1) * S, :] = vvv_t[h].T        # (S, d_h)
        n_blk = nhd // d_h                           # == H // d_h
        vvv_flat = jnp.concatenate(
            [stacked_ref[pl.ds(j, S, stride=n_blk), :] for j in range(n_blk)],
            axis=-1)                                              # (S, H)

        # ---- residual + LN -> fc -> residual + LN (shared LN params) -------
        y1 = _layer_norm(vvv_flat + x, g, bb)
        y2 = lax.dot_general(y1, wfc, (((1,), (1,)), ((), ())),
                             preferred_element_type=f32)          # y1 @ fc^T
        out_ref[b] = _layer_norm(y2 + y1, g, bb).astype(out_ref.dtype)


# ----------------------------- wrapper --------------------------------------

def encoder_layer_forward(enc_inputs, enc_self_attn_mask, params, *,
                          n_heads, d_h):
    del enc_self_attn_mask  # never used by the PyTorch forward
    x = enc_inputs
    if x.ndim == 2:
        x = x[:, None, :]
    x = x.astype(jnp.float32)
    B, S, H = x.shape
    nh = n_heads
    f32 = jnp.float32
    hi = lax.Precision.HIGHEST   # keep the prefolds exact (no bf16 truncation)

    # Static weight prefolding (wrapper side, tiny):
    #   W_eff   = W2 @ W1                    (nh*d_h, H)
    #   wka     = A^T/sqrt(d_h) folded into W_Keff   -> scores_VV  = wka @ x^T
    #   wqa     = A  /sqrt(d_h) folded into W_Qeff   -> scores_VV2 = wqa @ x^T
    a_s = params["A"].astype(f32) * (1.0 / math.sqrt(d_h))
    w_qeff = jnp.einsum("ok,kh->oh", params["W_Q2"].astype(f32),
                        params["W_Q1"].astype(f32),
                        precision=hi).reshape(nh, d_h, H)
    w_keff = jnp.einsum("ok,kh->oh", params["W_K2"].astype(f32),
                        params["W_K1"].astype(f32),
                        precision=hi).reshape(nh, d_h, H)
    wqa = jnp.einsum("dk,hkf->hdf", a_s, w_qeff, precision=hi).reshape(nh * d_h, H)
    wka = jnp.einsum("kd,hkf->hdf", a_s, w_keff, precision=hi).reshape(nh * d_h, H)
    # Stacked projection weight: rows [0,nhd)=wka, [nhd,2nhd)=W_V, [2nhd,3nhd)=wqa
    w_all = jnp.concatenate([wka, params["W_V"].astype(f32), wqa], axis=0)

    flops = B * (2 * (3 * nh * d_h) * H * S          # stacked projection
                 + 2 * (2 * nh * d_h * d_h * S)      # two attention matmuls
                 + 2 * S * H * H)                    # fc
    bytes_accessed = 4 * (B * S * H + 3 * nh * d_h * H + H * H + 2 * H
                          + B * S * H + B * nh * d_h * S)
    cost = pl.CostEstimate(flops=int(flops),
                           transcendentals=int(2 * B * nh * d_h * S),
                           bytes_accessed=int(bytes_accessed))

    out, attn = pl.pallas_call(
        functools.partial(_encoder_kernel, n_heads=nh, d_h=d_h, batch=B),
        out_shape=[
            jax.ShapeDtypeStruct((B, S, H), f32),
            jax.ShapeDtypeStruct((B, nh, d_h, S), f32),
        ],
        scratch_shapes=[pltpu.VMEM((nh * S, d_h), f32)],
        cost_estimate=cost,
    )(x, w_all, params["fc"].astype(f32),
      params["ln_gamma"].astype(f32), params["ln_beta"].astype(f32))
    return out, attn


# --------------------------- reference (pure JAX) ----------------------------

def reference(x, params, n_heads, d_h):
    hi = lax.Precision.HIGHEST
    B, S, H = x.shape
    lin = lambda t, w: jnp.einsum("...i,oi->...o", t, w, precision=hi)
    A = params["A"]
    scale = 1.0 / math.sqrt(d_h)

    q = lin(lin(x, params["W_Q1"]), params["W_Q2"]).reshape(
        B, S, n_heads, d_h).transpose(0, 2, 1, 3)
    k = lin(lin(x, params["W_K1"]), params["W_K2"]).reshape(
        B, S, n_heads, d_h).transpose(0, 2, 1, 3)
    v = lin(x, params["W_V"]).reshape(B, S, n_heads, d_h).transpose(0, 2, 1, 3)

    scores1 = jnp.einsum("ed,bhse->bhds", A, k, precision=hi) * scale
    attn1 = jax.nn.softmax(scores1, axis=-1)                 # (B, nh, d_h, S)
    vv = jnp.einsum("bhds,bhse->bhde", attn1, v, precision=hi)
    scores2 = jnp.einsum("bhse,de->bhsd", q, A, precision=hi) * scale
    attn2 = jax.nn.softmax(scores2, axis=-1)
    vvv = jnp.einsum("bhsd,bhde->bhse", attn2, vv, precision=hi)  # (B, nh, S, d_h)
    vvv_flat = vvv.reshape(B, S, H)   # PyTorch's reshape (the 6-D transpose(1,2)
                                      # only swaps singleton dims -> plain flatten)

    def ln(t):
        mu = t.mean(-1, keepdims=True)
        var = ((t - mu) ** 2).mean(-1, keepdims=True)
        return ((t - mu) / jnp.sqrt(var + 1e-5)) * params["ln_gamma"] \
            + params["ln_beta"]

    y1 = ln(vvv_flat + x)
    y2 = lin(y1, params["fc"])
    return ln(y2 + y1), attn1


# ----------------------------- main ------------------------------------------

def _xavier_uniform(key, shape, gain):
    fan_out, fan_in = shape
    bound = gain * math.sqrt(6.0 / (fan_in + fan_out))
    return jax.random.uniform(key, shape, jnp.float32, -bound, bound)


if __name__ == "__main__":
    B, S = 2, 8
    n_heads, d_h = 4, 8
    H = n_heads * d_h          # hidden_dim (residual add requires H == n_heads*d_h)
    gain = math.sqrt(2.0)      # nn.init.calculate_gain('relu')

    key = jax.random.PRNGKey(0)
    ks = jax.random.split(key, 8)
    params = {
        "W_Q1": _xavier_uniform(ks[0], (d_h // 2, H), gain),
        "W_Q2": _xavier_uniform(ks[1], (n_heads * d_h, d_h // 2), gain),
        "W_K1": _xavier_uniform(ks[2], (d_h // 2, H), gain),
        "W_K2": _xavier_uniform(ks[3], (n_heads * d_h, d_h // 2), gain),
        "W_V": _xavier_uniform(ks[4], (n_heads * d_h, H), gain),
        "fc": _xavier_uniform(ks[5], (H, H), gain),
        "A": jax.random.normal(ks[6], (d_h, d_h), jnp.float32),  # th.randn, untouched by _init_weights
        "ln_gamma": jnp.ones((1, H), jnp.float32),
        "ln_beta": jnp.zeros((1, H), jnp.float32),
    }
    # TODO(synk): W_Q / W_K linears exist in the PyTorch module but are unused
    # in forward, so they are omitted here.

    x = jax.random.normal(ks[7], (B, S, H), jnp.float32)
    attn_mask = jnp.zeros((B, S, S), jnp.float32)  # unused by the forward pass

    out, attn = encoder_layer_forward(x, attn_mask, params,
                                      n_heads=n_heads, d_h=d_h)
    out, attn = jax.block_until_ready((out, attn))

    ref_out, ref_attn = reference(x, params, n_heads, d_h)
    assert out.shape == (B, S, H) and attn.shape == (B, n_heads, d_h, S)
    # Prefolds and the reference both run at HIGHEST precision and the kernel
    # uses exact softmax divides, so only f32 matmul rounding remains.
    assert jnp.allclose(out, ref_out, atol=2e-3, rtol=2e-3), \
        float(jnp.max(jnp.abs(out - ref_out)))
    assert jnp.allclose(attn, ref_attn, atol=2e-3, rtol=2e-3), \
        float(jnp.max(jnp.abs(attn - ref_attn)))

    print("KERNEL_OK")
</pallas_src>

<mosaic_0001>
module attributes {stable_mosaic.version = 11 : i64} {
  func.func @_encoder_kernel(%arg0: memref<2x8x32xf32, #tpu.memory_space<vmem>>, %arg1: memref<96x32xf32, #tpu.memory_space<vmem>>, %arg2: memref<32x32xf32, #tpu.memory_space<vmem>>, %arg3: memref<1x32xf32, #tpu.memory_space<vmem>>, %arg4: memref<1x32xf32, #tpu.memory_space<vmem>>, %arg5: memref<2x8x32xf32, #tpu.memory_space<vmem>>, %arg6: memref<2x4x8x8xf32, #tpu.memory_space<vmem>>, %arg7: memref<32x8xf32, #tpu.memory_space<vmem>>) attributes {dimension_semantics = [], scalar_prefetch = 0 : i64, scratch_operands = 1 : i64, tpu.core_type = #tpu.core_type<tc>} {
    %c0 = arith.constant 0 : index
    %c0_0 = arith.constant 0 : index
    %0 = vector.load %arg3[%c0, %c0_0] : memref<1x32xf32, #tpu.memory_space<vmem>>, vector<1x32xf32>
    %c0_1 = arith.constant 0 : index
    %c0_2 = arith.constant 0 : index
    %1 = vector.load %arg4[%c0_1, %c0_2] : memref<1x32xf32, #tpu.memory_space<vmem>>, vector<1x32xf32>
    %c0_3 = arith.constant 0 : index
    %c0_4 = arith.constant 0 : index
    %2 = vector.load %arg1[%c0_3, %c0_4] : memref<96x32xf32, #tpu.memory_space<vmem>>, vector<96x32xf32>
    %c0_5 = arith.constant 0 : index
    %c0_6 = arith.constant 0 : index
    %3 = vector.load %arg2[%c0_5, %c0_6] : memref<32x32xf32, #tpu.memory_space<vmem>>, vector<32x32xf32>
    %c0_7 = arith.constant 0 : index
    %c0_8 = arith.constant 0 : index
    %c0_9 = arith.constant 0 : index
    %4 = vector.load %arg0[%c0_7, %c0_8, %c0_9] : memref<2x8x32xf32, #tpu.memory_space<vmem>>, vector<1x8x32xf32>
    %5 = vector.shape_cast %4 : vector<1x8x32xf32> to vector<8x32xf32>
    %cst = arith.constant dense<0.000000e+00> : vector<96x8xf32>
    %6 = tpu.matmul %2, %5, %cst {dimension_numbers = #tpu.dot_dimension_numbers<[1], [1], [0], [0], [0, 0, 1, 0], [], []>} : vector<96x32xf32>, vector<8x32xf32>, vector<96x8xf32> -> vector<96x8xf32>
    %7 = vector.extract_strided_slice %6 {offsets = [0, 0], sizes = [32, 8], strides = [1, 1]} : vector<96x8xf32> to vector<32x8xf32>
    %8 = vector.shape_cast %7 : vector<32x8xf32> to vector<4x8x8xf32>
    %9 = vector.extract_strided_slice %6 {offsets = [32, 0], sizes = [32, 8], strides = [1, 1]} : vector<96x8xf32> to vector<32x8xf32>
    %10 = vector.shape_cast %9 : vector<32x8xf32> to vector<4x8x8xf32>
    %11 = vector.extract_strided_slice %6 {offsets = [64, 0], sizes = [32, 8], strides = [1, 1]} : vector<96x8xf32> to vector<32x8xf32>
    %12 = vector.shape_cast %11 : vector<32x8xf32> to vector<4x8x8xf32>
    %cst_10 = arith.constant dense<0xFF800000> : vector<4x8xf32>
    %13 = vector.multi_reduction <maximumf>, %8, %cst_10 [2] : vector<4x8x8xf32> to vector<4x8xf32>
    %14 = vector.shape_cast %13 : vector<4x8xf32> to vector<4x8x1xf32>
    %15 = vector.broadcast %14 : vector<4x8x1xf32> to vector<4x8x8xf32>
    %16 = arith.subf %8, %15 : vector<4x8x8xf32>
    %17 = math.exp %16 : vector<4x8x8xf32>
    %cst_11 = arith.constant dense<0.000000e+00> : vector<4x8xf32>
    %18 = vector.multi_reduction <add>, %17, %cst_11 [2] : vector<4x8x8xf32> to vector<4x8xf32>
    %19 = vector.shape_cast %18 : vector<4x8xf32> to vector<4x8x1xf32>
    %20 = vector.broadcast %19 : vector<4x8x1xf32> to vector<4x8x8xf32>
    %21 = arith.divf %17, %20 : vector<4x8x8xf32>
    %c0_12 = arith.constant 0 : index
    %c0_13 = arith.constant 0 : index
    %c0_14 = arith.constant 0 : index
    %c0_15 = arith.constant 0 : index
    %22 = vector.load %arg6[%c0_12, %c0_13, %c0_14, %c0_15] : memref<2x4x8x8xf32, #tpu.memory_space<vmem>>, vector<1x4x8x8xf32>
    %23 = vector.shape_cast %22 : vector<1x4x8x8xf32> to vector<4x8x8xf32>
    %24 = vector.shape_cast %21 : vector<4x8x8xf32> to vector<1x4x8x8xf32>
    tpu.vector_store %arg6[%c0_12, %c0_13, %c0_14, %c0_15], %24 {strides = array<i32>} : memref<2x4x8x8xf32, #tpu.memory_space<vmem>>, vector<1x4x8x8xf32>,
    %cst_16 = arith.constant dense<0xFF800000> : vector<4x8xf32>
    %25 = vector.multi_reduction <maximumf>, %12, %cst_16 [1] : vector<4x8x8xf32> to vector<4x8xf32>
    %26 = vector.shape_cast %25 : vector<4x8xf32> to vector<4x1x8xf32>
    %27 = vector.broadcast %26 : vector<4x1x8xf32> to vector<4x8x8xf32>
    %28 = arith.subf %12, %27 : vector<4x8x8xf32>
    %29 = math.exp %28 : vector<4x8x8xf32>
    %cst_17 = arith.constant dense<0.000000e+00> : vector<4x8xf32>
    %30 = vector.multi_reduction <add>, %29, %cst_17 [1] : vector<4x8x8xf32> to vector<4x8xf32>
    %31 = vector.shape_cast %30 : vector<4x8xf32> to vector<4x1x8xf32>
    %32 = vector.broadcast %31 : vector<4x1x8xf32> to vector<4x8x8xf32>
    %33 = arith.divf %29, %32 : vector<4x8x8xf32>
    %cst_18 = arith.constant dense<0.000000e+00> : vector<4x8x8xf32>
    %34 = tpu.matmul %10, %21, %cst_18 {dimension_numbers = #tpu.dot_dimension_numbers<[2], [2], [1], [1], [0, 0, 0, 1, 1, 1], [0], [0]>} : vector<4x8x8xf32>, vector<4x8x8xf32>, vector<4x8x8xf32> -> vector<4x8x8xf32>
    %cst_19 = arith.constant dense<0.000000e+00> : vector<4x8x8xf32>
    %35 = tpu.matmul %34, %33, %cst_19 {dimension_numbers = #tpu.dot_dimension_numbers<[2], [1], [1], [2], [0, 0, 0, 1, 1, 2], [0], [0]>} : vector<4x8x8xf32>, vector<4x8x8xf32>, vector<4x8x8xf32> -> vector<4x8x8xf32>
    %36 = vector.extract_strided_slice %35 {offsets = [0, 0, 0], sizes = [1, 8, 8], strides = [1, 1, 1]} : vector<4x8x8xf32> to vector<1x8x8xf32>
    %37 = vector.shape_cast %36 : vector<1x8x8xf32> to vector<8x8xf32>
    %38 = tpu.transpose %37, [1, 0] : vector<8x8xf32> -> vector<8x8xf32>
    %c0_20 = arith.constant 0 : index
    %c0_21 = arith.constant 0 : index
    %39 = vector.load %arg7[%c0_20, %c0_21] : memref<32x8xf32, #tpu.memory_space<vmem>>, vector<8x8xf32>
    tpu.vector_store %arg7[%c0_20, %c0_21], %38 {strides = array<i32>} : memref<32x8xf32, #tpu.memory_space<vmem>>, vector<8x8xf32>,
    %40 = vector.extract_strided_slice %35 {offsets = [1, 0, 0], sizes = [1, 8, 8], strides = [1, 1, 1]} : vector<4x8x8xf32> to vector<1x8x8xf32>
    %41 = vector.shape_cast %40 : vector<1x8x8xf32> to vector<8x8xf32>
    %42 = tpu.transpose %41, [1, 0] : vector<8x8xf32> -> vector<8x8xf32>
    %c8 = arith.constant 8 : index
    %c0_22 = arith.constant 0 : index
    %43 = vector.load %arg7[%c8, %c0_22] : memref<32x8xf32, #tpu.memory_space<vmem>>, vector<8x8xf32>
    tpu.vector_store %arg7[%c8, %c0_22], %42 {strides = array<i32>} : memref<32x8xf32, #tpu.memory_space<vmem>>, vector<8x8xf32>,
    %44 = vector.extract_strided_slice %35 {offsets = [2, 0, 0], sizes = [1, 8, 8], strides = [1, 1, 1]} : vector<4x8x8xf32> to vector<1x8x8xf32>
    %45 = vector.shape_cast %44 : vector<1x8x8xf32> to vector<8x8xf32>
    %46 = tpu.transpose %45, [1, 0] : vector<8x8xf32> -> vector<8x8xf32>
    %c16 = arith.constant 16 : index
    %c0_23 = arith.constant 0 : index
    %47 = vector.load %arg7[%c16, %c0_23] : memref<32x8xf32, #tpu.memory_space<vmem>>, vector<8x8xf32>
    tpu.vector_store %arg7[%c16, %c0_23], %46 {strides = array<i32>} : memref<32x8xf32, #tpu.memory_space<vmem>>, vector<8x8xf32>,
    %48 = vector.extract_strided_slice %35 {offsets = [3, 0, 0], sizes = [1, 8, 8], strides = [1, 1, 1]} : vector<4x8x8xf32> to vector<1x8x8xf32>
    %49 = vector.shape_cast %48 : vector<1x8x8xf32> to vector<8x8xf32>
    %50 = tpu.transpose %49, [1, 0] : vector<8x8xf32> -> vector<8x8xf32>
    %c24 = arith.constant 24 : index
    %c0_24 = arith.constant 0 : index
    %51 = vector.load %arg7[%c24, %c0_24] : memref<32x8xf32, #tpu.memory_space<vmem>>, vector<8x8xf32>
    tpu.vector_store %arg7[%c24, %c0_24], %50 {strides = array<i32>} : memref<32x8xf32, #tpu.memory_space<vmem>>, vector<8x8xf32>,
    %c0_25 = arith.constant 0 : index
    %c0_26 = arith.constant 0 : index
    %52 = tpu.strided_load %arg7[%c0_25, %c0_26] {strides = array<i32: 4, 1>} : memref<32x8xf32, #tpu.memory_space<vmem>>, vector<8x8xf32>
    %c1 = arith.constant 1 : index
    %c0_27 = arith.constant 0 : index
    %53 = tpu.strided_load %arg7[%c1, %c0_27] {strides = array<i32: 4, 1>} : memref<32x8xf32, #tpu.memory_space<vmem>>, vector<8x8xf32>
    %c2 = arith.constant 2 : index
    %c0_28 = arith.constant 0 : index
    %54 = tpu.strided_load %arg7[%c2, %c0_28] {strides = array<i32: 4, 1>} : memref<32x8xf32, #tpu.memory_space<vmem>>, vector<8x8xf32>
    %c3 = arith.constant 3 : index
    %c0_29 = arith.constant 0 : index
    %55 = tpu.strided_load %arg7[%c3, %c0_29] {strides = array<i32: 4, 1>} : memref<32x8xf32, #tpu.memory_space<vmem>>, vector<8x8xf32>
    %56 = tpu.concatenate %52, %53, %54, %55 in 1 : vector<8x8xf32>, vector<8x8xf32>, vector<8x8xf32>, vector<8x8xf32> -> vector<8x32xf32>
    %57 = arith.addf %56, %5 : vector<8x32xf32>
    %cst_30 = arith.constant dense<0.000000e+00> : vector<8xf32>
    %58 = vector.multi_reduction <add>, %57, %cst_30 [1] : vector<8x32xf32> to vector<8xf32>
    %59 = vector.shape_cast %58 : vector<8xf32> to vector<8x1xf32>
    %cst_31 = arith.constant 3.200000e+01 : f32
    %60 = vector.broadcast %cst_31 : f32 to vector<8x1xf32>
    %61 = arith.divf %59, %60 : vector<8x1xf32>
    %62 = vector.broadcast %61 : vector<8x1xf32> to vector<8x32xf32>
    %63 = arith.subf %57, %62 : vector<8x32xf32>
    %64 = arith.mulf %63, %63 : vector<8x32xf32>
    %cst_32 = arith.constant dense<0.000000e+00> : vector<8xf32>
    %65 = vector.multi_reduction <add>, %64, %cst_32 [1] : vector<8x32xf32> to vector<8xf32>
    %66 = vector.shape_cast %65 : vector<8xf32> to vector<8x1xf32>
    %cst_33 = arith.constant 3.200000e+01 : f32
    %67 = vector.broadcast %cst_33 : f32 to vector<8x1xf32>
    %68 = arith.divf %66, %67 : vector<8x1xf32>
    %69 = vector.broadcast %61 : vector<8x1xf32> to vector<8x32xf32>
    %70 = arith.subf %57, %69 : vector<8x32xf32>
    %cst_34 = arith.constant 9.99999974E-6 : f32
    %71 = vector.broadcast %cst_34 : f32 to vector<8x1xf32>
    %72 = arith.addf %68, %71 : vector<8x1xf32>
    %73 = math.rsqrt %72 : vector<8x1xf32>
    %74 = vector.broadcast %73 : vector<8x1xf32> to vector<8x32xf32>
    %75 = arith.mulf %70, %74 : vector<8x32xf32>
    %76 = vector.broadcast %0 : vector<1x32xf32> to vector<8x32xf32>
    %77 = arith.mulf %75, %76 : vector<8x32xf32>
    %78 = vector.broadcast %1 : vector<1x32xf32> to vector<8x32xf32>
    %79 = arith.addf %77, %78 : vector<8x32xf32>
    %cst_35 = arith.constant dense<0.000000e+00> : vector<8x32xf32>
    %80 = tpu.matmul %79, %3, %cst_35 {dimension_numbers = #tpu.dot_dimension_numbers<[1], [1], [0], [0], [0, 0, 1, 0], [], []>} : vector<8x32xf32>, vector<32x32xf32>, vector<8x32xf32> -> vector<8x32xf32>
    %81 = arith.addf %80, %79 : vector<8x32xf32>
    %cst_36 = arith.constant dense<0.000000e+00> : vector<8xf32>
    %82 = vector.multi_reduction <add>, %81, %cst_36 [1] : vector<8x32xf32> to vector<8xf32>
    %83 = vector.shape_cast %82 : vector<8xf32> to vector<8x1xf32>
    %cst_37 = arith.constant 3.200000e+01 : f32
    %84 = vector.broadcast %cst_37 : f32 to vector<8x1xf32>
    %85 = arith.divf %83, %84 : vector<8x1xf32>
    %86 = vector.broadcast %85 : vector<8x1xf32> to vector<8x32xf32>
    %87 = arith.subf %81, %86 : vector<8x32xf32>
    %88 = arith.mulf %87, %87 : vector<8x32xf32>
    %cst_38 = arith.constant dense<0.000000e+00> : vector<8xf32>
    %89 = vector.multi_reduction <add>, %88, %cst_38 [1] : vector<8x32xf32> to vector<8xf32>
    %90 = vector.shape_cast %89 : vector<8xf32> to vector<8x1xf32>
    %cst_39 = arith.constant 3.200000e+01 : f32
    %91 = vector.broadcast %cst_39 : f32 to vector<8x1xf32>
    %92 = arith.divf %90, %91 : vector<8x1xf32>
    %93 = vector.broadcast %85 : vector<8x1xf32> to vector<8x32xf32>
    %94 = arith.subf %81, %93 : vector<8x32xf32>
    %cst_40 = arith.constant 9.99999974E-6 : f32
    %95 = vector.broadcast %cst_40 : f32 to vector<8x1xf32>
    %96 = arith.addf %92, %95 : vector<8x1xf32>
    %97 = math.rsqrt %96 : vector<8x1xf32>
    %98 = vector.broadcast %97 : vector<8x1xf32> to vector<8x32xf32>
    %99 = arith.mulf %94, %98 : vector<8x32xf32>
    %100 = vector.broadcast %0 : vector<1x32xf32> to vector<8x32xf32>
    %101 = arith.mulf %99, %100 : vector<8x32xf32>
    %102 = vector.broadcast %1 : vector<1x32xf32> to vector<8x32xf32>
    %103 = arith.addf %101, %102 : vector<8x32xf32>
    %c0_41 = arith.constant 0 : index
    %c0_42 = arith.constant 0 : index
    %c0_43 = arith.constant 0 : index
    %104 = vector.load %arg5[%c0_41, %c0_42, %c0_43] : memref<2x8x32xf32, #tpu.memory_space<vmem>>, vector<1x8x32xf32>
    %105 = vector.shape_cast %104 : vector<1x8x32xf32> to vector<8x32xf32>
    %106 = vector.shape_cast %103 : vector<8x32xf32> to vector<1x8x32xf32>
    tpu.vector_store %arg5[%c0_41, %c0_42, %c0_43], %106 {strides = array<i32>} : memref<2x8x32xf32, #tpu.memory_space<vmem>>, vector<1x8x32xf32>,
    %c1_44 = arith.constant 1 : index
    %c0_45 = arith.constant 0 : index
    %c0_46 = arith.constant 0 : index
    %107 = vector.load %arg0[%c1_44, %c0_45, %c0_46] : memref<2x8x32xf32, #tpu.memory_space<vmem>>, vector<1x8x32xf32>
    %108 = vector.shape_cast %107 : vector<1x8x32xf32> to vector<8x32xf32>
    %cst_47 = arith.constant dense<0.000000e+00> : vector<96x8xf32>
    %109 = tpu.matmul %2, %108, %cst_47 {dimension_numbers = #tpu.dot_dimension_numbers<[1], [1], [0], [0], [0, 0, 1, 0], [], []>} : vector<96x32xf32>, vector<8x32xf32>, vector<96x8xf32> -> vector<96x8xf32>
    %110 = vector.extract_strided_slice %109 {offsets = [0, 0], sizes = [32, 8], strides = [1, 1]} : vector<96x8xf32> to vector<32x8xf32>
    %111 = vector.shape_cast %110 : vector<32x8xf32> to vector<4x8x8xf32>
    %112 = vector.extract_strided_slice %109 {offsets = [32, 0], sizes = [32, 8], strides = [1, 1]} : vector<96x8xf32> to vector<32x8xf32>
    %113 = vector.shape_cast %112 : vector<32x8xf32> to vector<4x8x8xf32>
    %114 = vector.extract_strided_slice %109 {offsets = [64, 0], sizes = [32, 8], strides = [1, 1]} : vector<96x8xf32> to vector<32x8xf32>
    %115 = vector.shape_cast %114 : vector<32x8xf32> to vector<4x8x8xf32>
    %cst_48 = arith.constant dense<0xFF800000> : vector<4x8xf32>
    %116 = vector.multi_reduction <maximumf>, %111, %cst_48 [2] : vector<4x8x8xf32> to vector<4x8xf32>
    %117 = vector.shape_cast %116 : vector<4x8xf32> to vector<4x8x1xf32>
    %118 = vector.broadcast %117 : vector<4x8x1xf32> to vector<4x8x8xf32>
    %119 = arith.subf %111, %118 : vector<4x8x8xf32>
    %120 = math.exp %119 : vector<4x8x8xf32>
    %cst_49 = arith.constant dense<0.000000e+00> : vector<4x8xf32>
    %121 = vector.multi_reduction <add>, %120, %cst_49 [2] : vector<4x8x8xf32> to vector<4x8xf32>
    %122 = vector.shape_cast %121 : vector<4x8xf32> to vector<4x8x1xf32>
    %123 = vector.broadcast %122 : vector<4x8x1xf32> to vector<4x8x8xf32>
    %124 = arith.divf %120, %123 : vector<4x8x8xf32>
    %c1_50 = arith.constant 1 : index
    %c0_51 = arith.constant 0 : index
    %c0_52 = arith.constant 0 : index
    %c0_53 = arith.constant 0 : index
    %125 = vector.load %arg6[%c1_50, %c0_51, %c0_52, %c0_53] : memref<2x4x8x8xf32, #tpu.memory_space<vmem>>, vector<1x4x8x8xf32>
    %126 = vector.shape_cast %125 : vector<1x4x8x8xf32> to vector<4x8x8xf32>
    %127 = vector.shape_cast %124 : vector<4x8x8xf32> to vector<1x4x8x8xf32>
    tpu.vector_store %arg6[%c1_50, %c0_51, %c0_52, %c0_53], %127 {strides = array<i32>} : memref<2x4x8x8xf32, #tpu.memory_space<vmem>>, vector<1x4x8x8xf32>,
    %cst_54 = arith.constant dense<0xFF800000> : vector<4x8xf32>
    %128 = vector.multi_reduction <maximumf>, %115, %cst_54 [1] : vector<4x8x8xf32> to vector<4x8xf32>
    %129 = vector.shape_cast %128 : vector<4x8xf32> to vector<4x1x8xf32>
    %130 = vector.broadcast %129 : vector<4x1x8xf32> to vector<4x8x8xf32>
    %131 = arith.subf %115, %130 : vector<4x8x8xf32>
    %132 = math.exp %131 : vector<4x8x8xf32>
    %cst_55 = arith.constant dense<0.000000e+00> : vector<4x8xf32>
    %133 = vector.multi_reduction <add>, %132, %cst_55 [1] : vector<4x8x8xf32> to vector<4x8xf32>
    %134 = vector.shape_cast %133 : vector<4x8xf32> to vector<4x1x8xf32>
    %135 = vector.broadcast %134 : vector<4x1x8xf32> to vector<4x8x8xf32>
    %136 = arith.divf %132, %135 : vector<4x8x8xf32>
    %cst_56 = arith.constant dense<0.000000e+00> : vector<4x8x8xf32>
    %137 = tpu.matmul %113, %124, %cst_56 {dimension_numbers = #tpu.dot_dimension_numbers<[2], [2], [1], [1], [0, 0, 0, 1, 1, 1], [0], [0]>} : vector<4x8x8xf32>, vector<4x8x8xf32>, vector<4x8x8xf32> -> vector<4x8x8xf32>
    %cst_57 = arith.constant dense<0.000000e+00> : vector<4x8x8xf32>
    %138 = tpu.matmul %137, %136, %cst_57 {dimension_numbers = #tpu.dot_dimension_numbers<[2], [1], [1], [2], [0, 0, 0, 1, 1, 2], [0], [0]>} : vector<4x8x8xf32>, vector<4x8x8xf32>, vector<4x8x8xf32> -> vector<4x8x8xf32>
    %139 = vector.extract_strided_slice %138 {offsets = [0, 0, 0], sizes = [1, 8, 8], strides = [1, 1, 1]} : vector<4x8x8xf32> to vector<1x8x8xf32>
    %140 = vector.shape_cast %139 : vector<1x8x8xf32> to vector<8x8xf32>
    %141 = tpu.transpose %140, [1, 0] : vector<8x8xf32> -> vector<8x8xf32>
    %c0_58 = arith.constant 0 : index
    %c0_59 = arith.constant 0 : index
    %142 = vector.load %arg7[%c0_58, %c0_59] : memref<32x8xf32, #tpu.memory_space<vmem>>, vector<8x8xf32>
    tpu.vector_store %arg7[%c0_58, %c0_59], %141 {strides = array<i32>} : memref<32x8xf32, #tpu.memory_space<vmem>>, vector<8x8xf32>,
    %143 = vector.extract_strided_slice %138 {offsets = [1, 0, 0], sizes = [1, 8, 8], strides = [1, 1, 1]} : vector<4x8x8xf32> to vector<1x8x8xf32>
    %144 = vector.shape_cast %143 : vector<1x8x8xf32> to vector<8x8xf32>
    %145 = tpu.transpose %144, [1, 0] : vector<8x8xf32> -> vector<8x8xf32>
    %c8_60 = arith.constant 8 : index
    %c0_61 = arith.constant 0 : index
    %146 = vector.load %arg7[%c8_60, %c0_61] : memref<32x8xf32, #tpu.memory_space<vmem>>, vector<8x8xf32>
    tpu.vector_store %arg7[%c8_60, %c0_61], %145 {strides = array<i32>} : memref<32x8xf32, #tpu.memory_space<vmem>>, vector<8x8xf32>,
    %147 = vector.extract_strided_slice %138 {offsets = [2, 0, 0], sizes = [1, 8, 8], strides = [1, 1, 1]} : vector<4x8x8xf32> to vector<1x8x8xf32>
    %148 = vector.shape_cast %147 : vector<1x8x8xf32> to vector<8x8xf32>
    %149 = tpu.transpose %148, [1, 0] : vector<8x8xf32> -> vector<8x8xf32>
    %c16_62 = arith.constant 16 : index
    %c0_63 = arith.constant 0 : index
    %150 = vector.load %arg7[%c16_62, %c0_63] : memref<32x8xf32, #tpu.memory_space<vmem>>, vector<8x8xf32>
    tpu.vector_store %arg7[%c16_62, %c0_63], %149 {strides = array<i32>} : memref<32x8xf32, #tpu.memory_space<vmem>>, vector<8x8xf32>,
    %151 = vector.extract_strided_slice %138 {offsets = [3, 0, 0], sizes = [1, 8, 8], strides = [1, 1, 1]} : vector<4x8x8xf32> to vector<1x8x8xf32>
    %152 = vector.shape_cast %151 : vector<1x8x8xf32> to vector<8x8xf32>
    %153 = tpu.transpose %152, [1, 0] : vector<8x8xf32> -> vector<8x8xf32>
    %c24_64 = arith.constant 24 : index
    %c0_65 = arith.constant 0 : index
    %154 = vector.load %arg7[%c24_64, %c0_65] : memref<32x8xf32, #tpu.memory_space<vmem>>, vector<8x8xf32>
    tpu.vector_store %arg7[%c24_64, %c0_65], %153 {strides = array<i32>} : memref<32x8xf32, #tpu.memory_space<vmem>>, vector<8x8xf32>,
    %c0_66 = arith.constant 0 : index
    %c0_67 = arith.constant 0 : index
    %155 = tpu.strided_load %arg7[%c0_66, %c0_67] {strides = array<i32: 4, 1>} : memref<32x8xf32, #tpu.memory_space<vmem>>, vector<8x8xf32>
    %c1_68 = arith.constant 1 : index
    %c0_69 = arith.constant 0 : index
    %156 = tpu.strided_load %arg7[%c1_68, %c0_69] {strides = array<i32: 4, 1>} : memref<32x8xf32, #tpu.memory_space<vmem>>, vector<8x8xf32>
    %c2_70 = arith.constant 2 : index
    %c0_71 = arith.constant 0 : index
    %157 = tpu.strided_load %arg7[%c2_70, %c0_71] {strides = array<i32: 4, 1>} : memref<32x8xf32, #tpu.memory_space<vmem>>, vector<8x8xf32>
    %c3_72 = arith.constant 3 : index
    %c0_73 = arith.constant 0 : index
    %158 = tpu.strided_load %arg7[%c3_72, %c0_73] {strides = array<i32: 4, 1>} : memref<32x8xf32, #tpu.memory_space<vmem>>, vector<8x8xf32>
    %159 = tpu.concatenate %155, %156, %157, %158 in 1 : vector<8x8xf32>, vector<8x8xf32>, vector<8x8xf32>, vector<8x8xf32> -> vector<8x32xf32>
    %160 = arith.addf %159, %108 : vector<8x32xf32>
    %cst_74 = arith.constant dense<0.000000e+00> : vector<8xf32>
    %161 = vector.multi_reduction <add>, %160, %cst_74 [1] : vector<8x32xf32> to vector<8xf32>
    %162 = vector.shape_cast %161 : vector<8xf32> to vector<8x1xf32>
    %cst_75 = arith.constant 3.200000e+01 : f32
    %163 = vector.broadcast %cst_75 : f32 to vector<8x1xf32>
    %164 = arith.divf %162, %163 : vector<8x1xf32>
    %165 = vector.broadcast %164 : vector<8x1xf32> to vector<8x32xf32>
    %166 = arith.subf %160, %165 : vector<8x32xf32>
    %167 = arith.mulf %166, %166 : vector<8x32xf32>
    %cst_76 = arith.constant dense<0.000000e+00> : vector<8xf32>
    %168 = vector.multi_reduction <add>, %167, %cst_76 [1] : vector<8x32xf32> to vector<8xf32>
    %169 = vector.shape_cast %168 : vector<8xf32> to vector<8x1xf32>
    %cst_77 = arith.constant 3.200000e+01 : f32
    %170 = vector.broadcast %cst_77 : f32 to vector<8x1xf32>
    %171 = arith.divf %169, %170 : vector<8x1xf32>
    %172 = vector.broadcast %164 : vector<8x1xf32> to vector<8x32xf32>
    %173 = arith.subf %160, %172 : vector<8x32xf32>
    %cst_78 = arith.constant 9.99999974E-6 : f32
    %174 = vector.broadcast %cst_78 : f32 to vector<8x1xf32>
    %175 = arith.addf %171, %174 : vector<8x1xf32>
    %176 = math.rsqrt %175 : vector<8x1xf32>
    %177 = vector.broadcast %176 : vector<8x1xf32> to vector<8x32xf32>
    %178 = arith.mulf %173, %177 : vector<8x32xf32>
    %179 = vector.broadcast %0 : vector<1x32xf32> to vector<8x32xf32>
    %180 = arith.mulf %178, %179 : vector<8x32xf32>
    %181 = vector.broadcast %1 : vector<1x32xf32> to vector<8x32xf32>
    %182 = arith.addf %180, %181 : vector<8x32xf32>
    %cst_79 = arith.constant dense<0.000000e+00> : vector<8x32xf32>
    %183 = tpu.matmul %182, %3, %cst_79 {dimension_numbers = #tpu.dot_dimension_numbers<[1], [1], [0], [0], [0, 0, 1, 0], [], []>} : vector<8x32xf32>, vector<32x32xf32>, vector<8x32xf32> -> vector<8x32xf32>
    %184 = arith.addf %183, %182 : vector<8x32xf32>
    %cst_80 = arith.constant dense<0.000000e+00> : vector<8xf32>
    %185 = vector.multi_reduction <add>, %184, %cst_80 [1] : vector<8x32xf32> to vector<8xf32>
    %186 = vector.shape_cast %185 : vector<8xf32> to vector<8x1xf32>
    %cst_81 = arith.constant 3.200000e+01 : f32
    %187 = vector.broadcast %cst_81 : f32 to vector<8x1xf32>
    %188 = arith.divf %186, %187 : vector<8x1xf32>
    %189 = vector.broadcast %188 : vector<8x1xf32> to vector<8x32xf32>
    %190 = arith.subf %184, %189 : vector<8x32xf32>
    %191 = arith.mulf %190, %190 : vector<8x32xf32>
    %cst_82 = arith.constant dense<0.000000e+00> : vector<8xf32>
    %192 = vector.multi_reduction <add>, %191, %cst_82 [1] : vector<8x32xf32> to vector<8xf32>
    %193 = vector.shape_cast %192 : vector<8xf32> to vector<8x1xf32>
    %cst_83 = arith.constant 3.200000e+01 : f32
    %194 = vector.broadcast %cst_83 : f32 to vector<8x1xf32>
    %195 = arith.divf %193, %194 : vector<8x1xf32>
    %196 = vector.broadcast %188 : vector<8x1xf32> to vector<8x32xf32>
    %197 = arith.subf %184, %196 : vector<8x32xf32>
    %cst_84 = arith.constant 9.99999974E-6 : f32
    %198 = vector.broadcast %cst_84 : f32 to vector<8x1xf32>
    %199 = arith.addf %195, %198 : vector<8x1xf32>
    %200 = math.rsqrt %199 : vector<8x1xf32>
    %201 = vector.broadcast %200 : vector<8x1xf32> to vector<8x32xf32>
    %202 = arith.mulf %197, %201 : vector<8x32xf32>
    %203 = vector.broadcast %0 : vector<1x32xf32> to vector<8x32xf32>
    %204 = arith.mulf %202, %203 : vector<8x32xf32>
    %205 = vector.broadcast %1 : vector<1x32xf32> to vector<8x32xf32>
    %206 = arith.addf %204, %205 : vector<8x32xf32>
    %c1_85 = arith.constant 1 : index
    %c0_86 = arith.constant 0 : index
    %c0_87 = arith.constant 0 : index
    %207 = vector.load %arg5[%c1_85, %c0_86, %c0_87] : memref<2x8x32xf32, #tpu.memory_space<vmem>>, vector<1x8x32xf32>
    %208 = vector.shape_cast %207 : vector<1x8x32xf32> to vector<8x32xf32>
    %209 = vector.shape_cast %206 : vector<8x32xf32> to vector<1x8x32xf32>
    tpu.vector_store %arg5[%c1_85, %c0_86, %c0_87], %209 {strides = array<i32>} : memref<2x8x32xf32, #tpu.memory_space<vmem>>, vector<1x8x32xf32>,
    return
  }
}

</mosaic_0001>

<bundles_post_ra>
// kernel: tpu_custom_call.1
= control target key start
LH: loop header
LB: loop body
LE: loop exit
PB: predicated region body
PF: predicated region fallthrough
CT: control target
= control target key end

     0   :  { %12 = vsyncpa [#allocation4], 0  ;;  %vm43_vm0 = vcmask 261120   ;;  %s2174_s0 = inlined_call_operand.vmem [shape: f32[2,8,32], index: 0, kind: input, shape index: {}]   ;;  %s2175_s1 = inlined_call_operand.vmem [shape: f32[96,32], index: 1, kind: input, shape index: {}]   ;;  %s2176_s2 = inlined_call_operand.vmem [shape: f32[32,32], index: 2, kind: input, shape index: {}]   ;;  %s2177_s3 = inlined_call_operand.vmem [shape: f32[1,32], index: 3, kind: input, shape index: {}]   ;;  %s2178_s4 = inlined_call_operand.vmem [shape: f32[1,32], index: 4, kind: input, shape index: {}]   ;;  %s2179_s5 = inlined_call_operand.hbm [shape: f32[2,8,32], index: 5, kind: output, shape index: {0}]   ;;  %s2180_s6 = inlined_call_operand.hbm [shape: f32[2,4,8,8], index: 6, kind: output, shape index: {1}]  }
   0x1   :  { %v1803_v0 = vld [vmem:[%s2174_s0] sm:$0xff] }
   0x2   :  { %1559 = vmatpush.xpose.msk.msra.mxu0 %vm43_vm0, %v1803_v0  ;;  %v1810_v1 = vld [vmem:[%s2175_s1] sm:$0xff]  ;;  %1620 = vmatpush.xpose.msk.msra.mxu3 %vm43_vm0, %v1803_v0 }
   0x3   :  { %13 = vsyncpa [#allocation6], 0  ;;  %v1819_v2 = vld [vmem:[%s2175_s1 + $0x8] sm:$0xff]  ;;  %v1826_v3 = vld [vmem:[%s2175_s1 + $0x10] sm:$0xff]  ;;  %vm136_vm1 = vcmask 64512   ;;  %s1759_s24 = smov 16  }
   0x4   :  { %v1833_v4 = vld [vmem:[%s2175_s1 + $0x18] sm:$0xff]  ;;  %v1844_v13 = vld [vmem:[%s2175_s1 + $0x20] sm:$0xff]  ;;  %v1851_v14 = vld [vmem:[%s2175_s1 + $0x28] sm:$0xff]  ;;  %s1760_s25 = smov 8   ;;  %s1542_s15 = sshll.u32 %s2180_s6, 4  ;;  %s1543_s15 = int_to_ptr.hbm [resolvable:$true] %s1542_s15 }
   0x5   :  { %1560 = vmatmul.msk.f32.vlgmr.msra.gmra.mxu0 %vm43_vm0, %v1810_v1  ;;  %v1858_v18 = vld [vmem:[%s2175_s1 + $0x30] sm:$0xff]  ;;  %v1865_v19 = vld [vmem:[%s2175_s1 + $0x58] sm:$0xff]  ;;  %v1882_v30 = vld [vmem:[%s2175_s1 + $0x40] sm:$0xff]  ;;  %s1763_s16 = smov 128   ;;  %s1764_s6 = smov [#allocation3]  }
   0x6   :  { %1571 = vmatmul.msk.f32.vlgmr.msra.gmra.mxu3 %vm43_vm0, %v1865_v19  ;;  %v1872_v24 = vld [vmem:[%s2175_s1 + $0x38] sm:$0xff]  ;;  %v1893_v36 = vld [vmem:[%s2175_s1 + $0x48] sm:$0xff]  ;;  %v1904_v39 = vld [vmem:[%s2175_s1 + $0x50] sm:$0xff]  ;;  %s1527_s17 = sshll.u32 %s1764_s6, 4  ;;  %s1529_s20 = sshll.u32 %s2179_s5, 4  ;;  %s1528_s17 = int_to_ptr.vmem [resolvable:$true] %s1527_s17  ;;  %s1530_s20 = int_to_ptr.hbm [resolvable:$true] %s1529_s20 }
   0xd   :  { %1561 = vmatmul.msk.f32.gmra.mxu0 %vm43_vm0, %v1819_v2 }
  0x15   :  { %1562 = vmatmul.msk.f32.gmra.mxu0 %vm43_vm0, %v1826_v3 }
  0x1d   :  { %1563 = vmatmul.msk.f32.gmra.mxu0 %vm43_vm0, %v1833_v4 }
  0x25   :  { %1564 = vmatmul.msk.f32.gmra.mxu0 %vm43_vm0, %v1844_v13 }
  0x2d   :  { %1565 = vmatmul.msk.f32.gmra.mxu0 %vm43_vm0, %v1851_v14 }
  0x35   :  { %1566 = vmatmul.msk.f32.gmra.mxu0 %vm43_vm0, %v1858_v18 }
  0x3d   :  { %1567 = vmatmul.msk.f32.gmra.mxu0 %vm43_vm0, %v1872_v24 }
  0x45   :  { %1568 = vmatmul.msk.f32.gmra.mxu0 %vm43_vm0, %v1882_v30 }
  0x4d   :  { %1569 = vmatmul.msk.f32.gmra.mxu0 %vm43_vm0, %v1893_v36 }
  0x55   :  { %1570 = vmatmul.msk.f32.gmra.mxu0 %vm43_vm0, %v1904_v39 }
  0x82   :  { %v100_v5 = vpop.f32.mrf.mxu0 }
  0x83   :  { %v137_v6 = vsel %vm136_vm1, %v100_v5, -inf }
  0x84   :  { %138 = vmax.xlane.f32.xlu0 %v137_v6 }
  0x8a   :  { %v103_v7 = vpop.f32.mrf.mxu0 }
  0x8b   :  { %v140_v8 = vsel %vm136_vm1, %v103_v7, -inf }
  0x8c   :  { %141 = vmax.xlane.f32.xlu0 %v140_v8 }
  0x92   :  { %v106_v9 = vpop.f32.mrf.mxu0 }
  0x93   :  { %v143_v10 = vsel %vm136_vm1, %v106_v9, -inf }
  0x94   :  { %144 = vmax.xlane.f32.xlu1 %v143_v10 }
  0x9a   :  { %v109_v11 = vpop.f32.mrf.mxu0 }
  0x9b   :  { %v146_v12 = vsel %vm136_vm1, %v109_v11, -inf }
  0x9c   :  { %147 = vmax.xlane.f32.xlu1 %v146_v12 }
  0xa2   :  { %v112_v41 = vpop.f32.mrf.mxu0 }
  0xaa   :  { %v1910_v42 = vpop.f32.mrf.mxu0 }
  0xb2   :  { %v1912_v45 = vpop.f32.mrf.mxu0 }
  0xba   :  { %v1914_v54 = vpop.f32.mrf.mxu0 }
  0xf7   :  { %v139_v15 = vpop.xlane.xlu0 %138 }
  0xf8   :  { %v149_v16 = vsub.f32 %v100_v5, %v139_v15 }
  0xfa   :  { %v153_v17 = vmul.f32 1.442695, %v149_v16 }
  0xfc   :  { %1632 = vpow2.f32 %v153_v17 }
  0xff   :  { %v142_v20 = vpop.xlane.xlu0 %141 }
 0x100   :  { %v150_v21 = vsub.f32 %v103_v7, %v142_v20 }
 0x102   :  { %v1633_v22 = vpop.eup %1632  ;;  %v155_v23 = vmul.f32 1.442695, %v150_v21 }
 0x103   :  { %v161_v25 = vsel %vm136_vm1, %v1633_v22, 0.0 }
 0x104   :  { %1634 = vpow2.f32 %v155_v23  ;;  %162 = vadd.xlane.f32.xlu2 %v161_v25 }
 0x107   :  { %v145_v26 = vpop.xlane.xlu1 %144 }
 0x108   :  { %v151_v27 = vsub.f32 %v106_v9, %v145_v26  ;;  %v124_v9 = vpop.f32.mrf.mxu0 }
 0x109   :  { %v237_v15 = vsel %vm136_vm1, %v124_v9, -inf }
 0x10a   :  { %v1877_v28 = vpop.eup %1634  ;;  %v157_v29 = vmul.f32 1.442695, %v151_v27  ;;  %v238_v21 = vrot.slane %v237_v15, 4 }
 0x10b   :  { %v164_v31 = vsel %vm136_vm1, %v1877_v28, 0.0 }
 0x10c   :  { %1636 = vpow2.f32 %v157_v29  ;;  %165 = vadd.xlane.f32.xlu2 %v164_v31  ;;  %v239_v26 = vmax.f32 %v237_v15, %v238_v21 }
 0x10e   :  { %v240_v29 = vrot.slane %v239_v26, 2 }
 0x10f   :  { %v148_v32 = vpop.xlane.xlu1 %147 }
 0x110   :  { %v152_v33 = vsub.f32 %v109_v11, %v148_v32 }
 0x112   :  { %v1888_v34 = vpop.eup %1636  ;;  %v159_v35 = vmul.f32 1.442695, %v152_v33 }
 0x113   :  { %v167_v37 = vsel %vm136_vm1, %v1888_v34, 0.0 }
 0x114   :  { %1638 = vpow2.f32 %v159_v35  ;;  %168 = vadd.xlane.f32.xlu0 %v167_v37  ;;  %v241_v37 = vmax.f32 %v239_v26, %v240_v29 }
 0x11a   :  { %v1899_v38 = vpop.eup %1638 }
 0x11b   :  { %v170_v40 = vsel %vm136_vm1, %v1899_v38, 0.0 }
 0x11c   :  { %171 = vadd.xlane.f32.xlu1 %v170_v40 }
 0x177   :  { %v163_v43 = vpop.xlane.xlu2 %162 }
 0x178   :  { %1640 = vrcp.f32 %v163_v43  ;;  %v184_v50 = vand.u32 2147483648, %v163_v43  ;;  %v182_v51 = vand.u32 2147483647, %v163_v43  ;;  %vm178_vm3 = vweird.f32 %v163_v43 }
 0x17a   :  { %v185_v58 = vor.u32 1.1754944e-38, %v184_v50  ;;  %vm183_vm5 = vcmp.eq.f32.partialorder %v182_v51, 8.507059e+37 }
 0x17e   :  { %v1641_v44 = vpop.eup %1640 }
 0x17f   :  { %v174_v46 = vmul.f32 %v1641_v44, %v163_v43  ;;  %v166_v47 = vpop.xlane.xlu2 %165  ;;  %vm179_vm2 = vweird.f32 %v1641_v44 }
 0x180   :  { %1642 = vrcp.f32 %v166_v47  ;;  %vm180_vm4 = vmor %vm178_vm3, %vm179_vm2  ;;  %v199_v61 = vand.u32 2147483648, %v166_v47  ;;  %v197_v5 = vand.u32 2147483647, %v166_v47  ;;  %vm193_vm7 = vweird.f32 %v166_v47 }
 0x181   :  { %v175_v48 = vsub.f32 1.0, %v174_v46  ;;  %v242_v46 = vrot.slane %v241_v37, 1 }
 0x182   :  { %v200_v8 = vor.u32 1.1754944e-38, %v199_v61  ;;  %vm198_vm9 = vcmp.eq.f32.partialorder %v197_v5, 8.507059e+37 }
 0x183   :  { %v176_v49 = vmul.f32 %v1641_v44, %v175_v48 }
 0x185   :  { %v177_v52 = vadd.f32 %v1641_v44, %v176_v49 }
 0x186   :  { %v1643_v53 = vpop.eup %1642 }
 0x187   :  { %v189_v55 = vmul.f32 %v1643_v53, %v166_v47  ;;  %v169_v56 = vpop.xlane.xlu0 %168  ;;  %v181_v57 = vsel %vm180_vm4, %v1641_v44, %v177_v52  ;;  %vm194_vm6 = vweird.f32 %v1643_v53 }
 0x188   :  { %1644 = vrcp.f32 %v169_v56  ;;  %v186_v60 = vsel %vm183_vm5, %v185_v58, %v181_v57  ;;  %vm195_vm8 = vmor %vm193_vm7, %vm194_vm6  ;;  %v212_v25 = vand.u32 2147483647, %v169_v56  ;;  %vm208_vm11 = vweird.f32 %v169_v56 }
 0x189   :  { %v190_v59 = vsub.f32 1.0, %v189_v55  ;;  %v187_v62 = vmul.f32 %v1633_v22, %v186_v60  ;;  %v214_v22 = vand.u32 2147483648, %v169_v56 }
 0x18a   :  { %vm213_vm13 = vcmp.eq.f32.partialorder %v212_v25, 8.507059e+37 }
 0x18b   :  { %v191_v63 = vmul.f32 %v1643_v53, %v190_v59  ;;  %233 = vst.msk [vmem:[#allocation5] sm:$0xff] %vm136_vm1, %v187_v62  ;;  %1572 = vmatpush.xpose.msk.msra.mxu1 %vm136_vm1, %v187_v62  ;;  %v215_v32 = vor.u32 1.1754944e-38, %v214_v22 }
 0x18d   :  { %v192_v6 = vadd.f32 %v1643_v53, %v191_v63 }
 0x18e   :  { %v1645_v7 = vpop.eup %1644  ;;  %1573 = vmatmul.msk.f32.vlgmr.msra.gmra.mxu1 %vm136_vm1, %v112_v41 }
 0x18f   :  { %v204_v10 = vmul.f32 %v1645_v7, %v169_v56  ;;  %v172_v11 = vpop.xlane.xlu1 %171  ;;  %v196_v12 = vsel %vm195_vm8, %v1643_v53, %v192_v6  ;;  %vm209_vm10 = vweird.f32 %v1645_v7 }
 0x190   :  { %1646 = vrcp.f32 %v172_v11  ;;  %v201_v16 = vsel %vm198_vm9, %v200_v8, %v196_v12  ;;  %vm210_vm12 = vmor %vm208_vm11, %vm209_vm10  ;;  %v229_v48 = vand.u32 2147483648, %v172_v11  ;;  %v227_v49 = vand.u32 2147483647, %v172_v11 }
 0x191   :  { %v205_v17 = vsub.f32 1.0, %v204_v10  ;;  %v202_v20 = vmul.f32 %v1877_v28, %v201_v16  ;;  %v127_v28 = vpop.f32.mrf.mxu0  ;;  %vm223_vm15 = vweird.f32 %v172_v11 }
 0x192   :  { %v244_v41 = vsel %vm136_vm1, %v127_v28, -inf  ;;  %v230_v56 = vor.u32 1.1754944e-38, %v229_v48  ;;  %vm228_vm3 = vcmp.eq.f32.partialorder %v227_v49, 8.507059e+37 }
 0x193   :  { %v206_v23 = vmul.f32 %v1645_v7, %v205_v17  ;;  %234 = vst.msk [vmem:[#allocation5 + $0x8] sm:$0xff] %vm136_vm1, %v202_v20  ;;  %1574 = vmatpush.xpose.msk.msrb.mxu3 %vm136_vm1, %v202_v20  ;;  %v245_v47 = vrot.slane %v244_v41, 4 }
 0x195   :  { %v207_v27 = vadd.f32 %v1645_v7, %v206_v23  ;;  %v246_v51 = vmax.f32 %v244_v41, %v245_v47 }
 0x196   :  { %v1647_v31 = vpop.eup %1646  ;;  %1575 = vmatmul.msk.f32.vlgmr.msrb.gmra.mxu3 %vm136_vm1, %v1910_v42  ;;  %v243_v42 = vmax.f32 %v241_v37, %v242_v46 }
 0x197   :  { %v211_v33 = vsel %vm210_vm12, %v1645_v7, %v207_v27  ;;  %v219_v35 = vmul.f32 %v1647_v31, %v172_v11  ;;  %vm224_vm14 = vweird.f32 %v1647_v31  ;;  %v247_v55 = vrot.slane %v246_v51, 2  ;;  %v133_v7 = vpop.f32.mrf.mxu3 }
 0x198   :  { %v216_v40 = vsel %vm213_vm13, %v215_v32, %v211_v33  ;;  %v265_v53 = vsub.f32 %v124_v9, %v243_v42  ;;  %vm225_vm2 = vmor %vm223_vm15, %vm224_vm14  ;;  %v258_v9 = vsel %vm136_vm1, %v133_v7, -inf }
 0x199   :  { %v220_v43 = vsub.f32 1.0, %v219_v35  ;;  %v217_v44 = vmul.f32 %v1888_v34, %v216_v40  ;;  %v130_v34 = vpop.f32.mrf.mxu0  ;;  %v248_v59 = vmax.f32 %v246_v51, %v247_v55  ;;  %v259_v11 = vrot.slane %v258_v9, 4 }
 0x19a   :  { %v269_v58 = vmul.f32 1.442695, %v265_v53  ;;  %v251_v60 = vsel %vm136_vm1, %v130_v34, -inf }
 0x19b   :  { %v221_v50 = vmul.f32 %v1647_v31, %v220_v43  ;;  %235 = vst.msk [vmem:[#allocation5 + $0x10] sm:$0xff] %vm136_vm1, %v217_v44  ;;  %1576 = vmatpush.xpose.msk.msra.mxu3 %vm136_vm1, %v217_v44  ;;  %v252_v62 = vrot.slane %v251_v60, 4  ;;  %v249_v5 = vrot.slane %v248_v59, 1  ;;  %v260_v16 = vmax.f32 %v258_v9, %v259_v11 }
 0x19c   :  { %1648 = vpow2.f32 %v269_v58 }
 0x19d   :  { %v222_v52 = vadd.f32 %v1647_v31, %v221_v50  ;;  %v253_v6 = vmax.f32 %v251_v60, %v252_v62  ;;  %v261_v22 = vrot.slane %v260_v16, 2 }
 0x19e   :  { %1577 = vmatmul.msk.f32.vlgmr.msra.gmra.mxu3 %vm136_vm1, %v1912_v45  ;;  %v250_v45 = vmax.f32 %v248_v59, %v249_v5 }
 0x19f   :  { %v226_v57 = vsel %vm225_vm2, %v1647_v31, %v222_v52  ;;  %v254_v8 = vrot.slane %v253_v6, 2  ;;  %v262_v26 = vmax.f32 %v260_v16, %v261_v22 }
 0x1a0   :  { %v231_v61 = vsel %vm228_vm3, %v230_v56, %v226_v57  ;;  %v266_v10 = vsub.f32 %v127_v28, %v250_v45 }
 0x1a1   :  { %v232_v63 = vmul.f32 %v1899_v38, %v231_v61  ;;  %v255_v12 = vmax.f32 %v253_v6, %v254_v8  ;;  %v263_v31 = vrot.slane %v262_v26, 1 }
 0x1a2   :  { %v1938_v15 = vpop.eup %1648  ;;  %v271_v38 = vmul.f32 1.442695, %v266_v10 }
 0x1a3   :  { %236 = vst.msk [vmem:[#allocation5 + $0x18] sm:$0xff] %vm136_vm1, %v232_v63  ;;  %1578 = vmatpush.xpose.msk.msrb.mxu1 %vm136_vm1, %v232_v63  ;;  %v277_v17 = vsel %vm136_vm1, %v1938_v15, 0.0  ;;  %v256_v20 = vrot.slane %v255_v12, 1  ;;  %v264_v33 = vmax.f32 %v262_v26, %v263_v31 }
 0x1a4   :  { %v278_v21 = vrot.slane %v277_v17, 4  ;;  %1650 = vpow2.f32 %v271_v38 }
 0x1a5   :  { %v257_v23 = vmax.f32 %v255_v12, %v256_v20  ;;  %v268_v41 = vsub.f32 %v133_v7, %v264_v33 }
 0x1a6   :  { %1579 = vmatmul.msk.f32.vlgmr.msrb.gmra.mxu1 %vm136_vm1, %v1914_v54  ;;  %v279_v25 = vadd.f32 %v278_v21, %v277_v17 }
 0x1a7   :  { %v267_v27 = vsub.f32 %v130_v34, %v257_v23  ;;  %v275_v46 = vmul.f32 1.442695, %v268_v41 }
 0x1a8   :  { %v280_v29 = vrot.slane %v279_v25, 2 }
 0x1a9   :  { %v273_v32 = vmul.f32 1.442695, %v267_v27 }
 0x1aa   :  { %v1942_v54 = vpop.eup %1650  ;;  %v281_v28 = vadd.f32 %v280_v29, %v279_v25 }
 0x1ab   :  { %v284_v35 = vsel %vm136_vm1, %v1942_v54, 0.0  ;;  %1652 = vpow2.f32 %v273_v32 }
 0x1ac   :  { %v282_v37 = vrot.slane %v281_v28, 1  ;;  %v285_v40 = vrot.slane %v284_v35, 4 }
 0x1ae   :  { %v283_v43 = vadd.f32 %v282_v37, %v281_v28  ;;  %v286_v44 = vadd.f32 %v285_v40, %v284_v35 }
 0x1b0   :  { %1654 = vrcp.f32 %v283_v43  ;;  %v287_v47 = vrot.slane %v286_v44, 2  ;;  %vm310_vm4 = vweird.f32 %v283_v43  ;;  %v314_v59 = vand.u32 2147483647, %v283_v43 }
 0x1b1   :  { %v1946_v48 = vpop.eup %1652  ;;  %1656 = vpow2.f32 %v275_v46  ;;  %v316_v60 = vand.u32 2147483648, %v283_v43 }
 0x1b2   :  { %v288_v49 = vadd.f32 %v287_v47, %v286_v44  ;;  %v291_v50 = vsel %vm136_vm1, %v1946_v48, 0.0  ;;  %vm315_vm7 = vcmp.eq.f32.partialorder %v314_v59, 8.507059e+37 }
 0x1b3   :  { %v292_v42 = vrot.slane %v291_v50, 4  ;;  %v317_v7 = vor.u32 1.1754944e-38, %v316_v60 }
 0x1b4   :  { %v289_v51 = vrot.slane %v288_v49, 1 }
 0x1b5   :  { %v293_v52 = vadd.f32 %v292_v42, %v291_v50 }
 0x1b6   :  { %v1655_v53 = vpop.eup %1654  ;;  %v290_v55 = vadd.f32 %v289_v51, %v288_v49 }
 0x1b7   :  { %v1950_v56 = vpop.eup %1656  ;;  %v294_v34 = vrot.slane %v293_v52, 2  ;;  %v306_v57 = vmul.f32 %v1655_v53, %v283_v43  ;;  %vm311_vm5 = vweird.f32 %v1655_v53 }
 0x1b8   :  { %1658 = vrcp.f32 %v290_v55  ;;  %v298_v58 = vsel %vm136_vm1, %v1950_v56, 0.0  ;;  %vm312_vm6 = vmor %vm310_vm4, %vm311_vm5  ;;  %vm325_vm8 = vweird.f32 %v290_v55  ;;  %v329_v20 = vand.u32 2147483647, %v290_v55 }
 0x1b9   :  { %v295_v61 = vadd.f32 %v294_v34, %v293_v52  ;;  %v299_v62 = vrot.slane %v298_v58, 4  ;;  %v307_v63 = vsub.f32 1.0, %v306_v57  ;;  %v331_v21 = vand.u32 2147483648, %v290_v55 }
 0x1ba   :  { %vm330_vm11 = vcmp.eq.f32.partialorder %v329_v20, 8.507059e+37 }
 0x1bb   :  { %v296_v5 = vrot.slane %v295_v61, 1  ;;  %v300_v6 = vadd.f32 %v299_v62, %v298_v58  ;;  %v308_v45 = vmul.f32 %v1655_v53, %v307_v63  ;;  %v332_v29 = vor.u32 1.1754944e-38, %v331_v21 }
 0x1bd   :  { %v297_v8 = vadd.f32 %v296_v5, %v295_v61  ;;  %v301_v9 = vrot.slane %v300_v6, 2  ;;  %v309_v10 = vadd.f32 %v1655_v53, %v308_v45  ;;  %v1965_v5 = vld [vmem:[%s2174_s0 + $0x8] sm:$0xff]  ;;  %s1758_s0 = smov 24  }
 0x1be   :  { %v1659_v11 = vpop.eup %1658 }
 0x1bf   :  { %1660 = vrcp.f32 %v297_v8  ;;  %v302_v12 = vadd.f32 %v301_v9, %v300_v6  ;;  %v313_v38 = vsel %vm312_vm6, %v1655_v53, %v309_v10  ;;  %v321_v16 = vmul.f32 %v1659_v11, %v290_v55 }
 0x1c0   :  { %v318_v17 = vsel %vm315_vm7, %v317_v7, %v313_v38  ;;  %vm326_vm9 = vweird.f32 %v1659_v11  ;;  %vm340_vm12 = vweird.f32 %v297_v8  ;;  %v346_v35 = vand.u32 2147483648, %v297_v8 }
 0x1c1   :  { %v303_v22 = vrot.slane %v302_v12, 1  ;;  %v319_v23 = vmul.f32 %v1938_v15, %v318_v17  ;;  %v322_v25 = vsub.f32 1.0, %v321_v16  ;;  %vm327_vm10 = vmor %vm325_vm8, %vm326_vm9  ;;  %v344_v41 = vand.u32 2147483647, %v297_v8 }
 0x1c2   :  { %v347_v46 = vor.u32 1.1754944e-38, %v346_v35  ;;  %vm713_vm6 = vcmask 130048   ;;  %vm715_vm7 = vcmask 195584  }
 0x1c3   :  { %v304_v26 = vadd.f32 %v303_v22, %v302_v12  ;;  %487 = vmatpush.msra.mxu2 %v319_v23  ;;  %v323_v27 = vmul.f32 %v1659_v11, %v322_v25  ;;  %vm345_vm15 = vcmp.eq.f32.partialorder %v344_v41, 8.507059e+37 }
 0x1c5   :  { %v1661_v31 = vpop.eup %1660  ;;  %1662 = vrcp.f32 %v304_v26  ;;  %v324_v32 = vadd.f32 %v1659_v11, %v323_v27  ;;  %vm355_vm2 = vweird.f32 %v304_v26  ;;  %v361_v50 = vand.u32 2147483648, %v304_v26 }
 0x1c6   :  { %v336_v28 = vmul.f32 %v1661_v31, %v297_v8  ;;  %vm341_vm13 = vweird.f32 %v1661_v31  ;;  %v359_v52 = vand.u32 2147483647, %v304_v26 }
 0x1c7   :  { %v328_v33 = vsel %vm327_vm10, %v1659_v11, %v324_v32  ;;  %vm342_vm14 = vmor %vm340_vm12, %vm341_vm13 }
 0x1c8   :  { %v333_v37 = vsel %vm330_vm11, %v332_v29, %v328_v33  ;;  %v337_v40 = vsub.f32 1.0, %v336_v28  ;;  %vm360_vm5 = vcmp.eq.f32.partialorder %v359_v52, 8.507059e+37 }
 0x1c9   :  { %v334_v15 = vmul.f32 %v1942_v54, %v333_v37  ;;  %v362_v54 = vor.u32 1.1754944e-38, %v361_v50 }
 0x1ca   :  { %v338_v43 = vmul.f32 %v1661_v31, %v337_v40 }
 0x1cb   :  { %v1663_v44 = vpop.eup %1662  ;;  %510 = vmatpush.msrb.mxu3 %v334_v15 }
 0x1cc   :  { %v339_v47 = vadd.f32 %v1661_v31, %v338_v43  ;;  %v351_v49 = vmul.f32 %v1663_v44, %v304_v26  ;;  %vm356_vm3 = vweird.f32 %v1663_v44 }
 0x1cd   :  { %vm357_vm4 = vmor %vm355_vm2, %vm356_vm3 }
 0x1ce   :  { %v343_v42 = vsel %vm342_vm14, %v1661_v31, %v339_v47  ;;  %v352_v51 = vsub.f32 1.0, %v351_v49 }
 0x1cf   :  { %v348_v53 = vsel %vm345_vm15, %v347_v46, %v343_v42 }
 0x1d0   :  { %v349_v55 = vmul.f32 %v1946_v48, %v348_v53  ;;  %v353_v34 = vmul.f32 %v1663_v44, %v352_v51 }
 0x1d2   :  { %533 = vmatpush.msra.mxu1 %v349_v55  ;;  %v354_v57 = vadd.f32 %v1663_v44, %v353_v34 }
 0x1d4   :  { %v358_v58 = vsel %vm357_vm4, %v1663_v44, %v354_v57  ;;  %1590 = vmatpush.xpose.msk.msrb.mxu1 %vm43_vm0, %v1965_v5  ;;  %v1761_v44 = vmov 32.0  }
 0x1d5   :  { %v363_v59 = vsel %vm360_vm5, %v362_v54, %v358_v58 }
 0x1d6   :  { %v364_v60 = vmul.f32 %v1950_v56, %v363_v59 }
 0x1d8   :  { %556 = vmatpush.msrb.mxu2 %v364_v60 }
 0x20b   :  { %v388_v61 = vpop.f32.mrf.mxu1 }
 0x20c   :  { %1580 = vmatmul.msk.f32.vlgmr.msra.gmra.mxu2 %vm136_vm1, %v388_v61 }
 0x20d   :  { %1621 = vmatpush.xpose.msk.msra.mxu2 %vm43_vm0, %v1965_v5 }
 0x219   :  { %v414_v62 = vpop.f32.mrf.mxu3 }
 0x21a   :  { %1581 = vmatmul.msk.f32.vlgmr.msrb.gmra.mxu3 %vm136_vm1, %v414_v62  ;;  %v2038_v62 = vld [vmem:[%s2176_s2 + $0x18] sm:$0xff] }
 0x21b   :  { %1584 = vmatpush.xpose.msk.msra.mxu3 %vm43_vm0, %v2038_v62 }
 0x221   :  { %v440_v63 = vpop.f32.mrf.mxu3 }
 0x222   :  { %1582 = vmatmul.msk.f32.vlgmr.msra.gmra.mxu1 %vm136_vm1, %v440_v63  ;;  %v2045_v63 = vld [vmem:[%s2176_s2 + $0x10] sm:$0xff] }
 0x223   :  { %v466_v48 = vpop.f32.mrf.mxu1  ;;  %1585 = vmatpush.xpose.msk.msra.mxu3 %vm43_vm0, %v2045_v63 }
 0x224   :  { %1583 = vmatmul.msk.f32.vlgmr.msrb.gmra.mxu2 %vm136_vm1, %v466_v48  ;;  %v2052_v48 = vld [vmem:[%s2176_s2 + $0x8] sm:$0xff] }
 0x227   :  { %1586 = vmatpush.xpose.msk.msra.mxu3 %vm43_vm0, %v2052_v48 }
 0x22a   :  { %1591 = vmatmul.msk.f32.vlgmr.msrb.gmra.mxu1 %vm43_vm0, %v1810_v1 }
 0x22c   :  { %1599 = vmatmul.msk.f32.vlgmr.msra.gmra.mxu2 %vm43_vm0, %v1882_v30 }
 0x232   :  { %1592 = vmatmul.msk.f32.gmra.mxu1 %vm43_vm0, %v1819_v2 }
 0x234   :  { %1600 = vmatmul.msk.f32.gmra.mxu2 %vm43_vm0, %v1893_v36 }
 0x23a   :  { %1593 = vmatmul.msk.f32.gmra.mxu1 %vm43_vm0, %v1826_v3 }
 0x23c   :  { %1601 = vmatmul.msk.f32.gmra.mxu2 %vm43_vm0, %v1904_v39 }
 0x242   :  { %1594 = vmatmul.msk.f32.gmra.mxu1 %vm43_vm0, %v1833_v4 }
 0x244   :  { %1602 = vmatmul.msk.f32.gmra.mxu2 %vm43_vm0, %v1865_v19 }
 0x24a   :  { %1595 = vmatmul.msk.f32.gmra.mxu1 %vm43_vm0, %v1844_v13 }
 0x252   :  { %1596 = vmatmul.msk.f32.gmra.mxu1 %vm43_vm0, %v1851_v14 }
 0x25a   :  { %1597 = vmatmul.msk.f32.gmra.mxu1 %vm43_vm0, %v1858_v18 }
 0x262   :  { %1598 = vmatmul.msk.f32.gmra.mxu1 %vm43_vm0, %v1872_v24 }
 0x28f   :  { %v489_v56 = vpop.f32.mrf.mxu2 }
 0x290   :  { %561 = vxpose.xlu2.b32.start.end [1/1] (short) (narrow) %v489_v56, 8  ;;  %v2059_v56 = vld [vmem:[%s2176_s2] sm:$0xff] }
 0x291   :  { %1587 = vmatpush.xpose.msk.msra.mxu3 %vm43_vm0, %v2059_v56 }
 0x29d   :  { %v512_v6 = vpop.f32.mrf.mxu3 }
 0x29e   :  { %594 = vxpose.xlu0.b32.start.end [1/1] (short) (narrow) %v512_v6, 8 }
 0x29f   :  { %v535_v1 = vpop.f32.mrf.mxu1 }
 0x2a0   :  { %627 = vxpose.xlu1.b32.start.end [1/1] (short) (narrow) %v535_v1, 8 }
 0x2a7   :  { %v558_v2 = vpop.f32.mrf.mxu2  ;;  %v837_v18 = vpop.f32.mrf.mxu1 }
 0x2a8   :  { %660 = vxpose.xlu2.b32.start.end [1/1] (short) (narrow) %v558_v2, 8  ;;  %v873_v39 = vsel %vm136_vm1, %v837_v18, -inf }
 0x2af   :  { %v840_v24 = vpop.f32.mrf.mxu1 }
 0x2b0   :  { %v876_v45 = vsel %vm136_vm1, %v840_v24, -inf }
 0x2b7   :  { %v843_v7 = vpop.f32.mrf.mxu1 }
 0x2b8   :  { %v879_v8 = vsel %vm136_vm1, %v843_v7, -inf }
 0x2bf   :  { %v846_v22 = vpop.f32.mrf.mxu1 }
 0x2c0   :  { %v882_v23 = vsel %vm136_vm1, %v846_v22, -inf }
 0x329   :  { %v577_v3 = vpop.trf.xlu2 }
 0x32a   :  { %593 = vst.msk [vmem:[#allocation2] sm:$0xff] %vm136_vm1, %v577_v3 }
 0x341   :  { %v676_v4 = vpop.trf.xlu2 }
 0x342   :  { %692 = vst.msk [vmem:[#allocation2 + $0x18] sm:$0xff] %vm136_vm1, %v676_v4  ;;  %v610_v19 = vpop.trf.xlu0 }
 0x343   :  { %626 = vst.msk [vmem:[#allocation2 + $0x8] sm:$0xff] %vm136_vm1, %v610_v19 }
 0x344   :  { %v643_v30 = vpop.trf.xlu1 }
 0x345   :  { %659 = vst.msk [vmem:[#allocation2 + $0x10] sm:$0xff] %vm136_vm1, %v643_v30 }
 0x34c   :  { %v699_v13 = vld [vmem:[#allocation2 + $0x3] ss:$4 sm:$0xff]  ;;  %v697_v14 = vld [vmem:[#allocation2 + $0x2] ss:$4 sm:$0xff]  ;;  %v695_v36 = vld [vmem:[#allocation2 + $0x1] ss:$4 sm:$0xff] }
 0x34d   :  { %709 = vrot.lane.b32.xlu1 %v699_v13, %s1758_s0  ;;  %705 = vrot.lane.b32.xlu2 %v697_v14, %s1759_s24  ;;  %v693_v10 = vld [vmem:[#allocation2] ss:$4 sm:$0xff] }
 0x34e   :  { %701 = vrot.lane.b32.xlu0 %v695_v36, %s1760_s25 }
 0x376   :  { %874 = vmax.xlane.f32.xlu2 %v873_v39 }
 0x378   :  { %877 = vmax.xlane.f32.xlu0 %v876_v45 }
 0x37e   :  { %880 = vmax.xlane.f32.xlu2 %v879_v8 }
 0x3a7   :  { %v706_v11 = vpop.permute.xlu2 %705 }
 0x3bf   :  { %v710_v38 = vpop.permute.xlu1 %709 }
 0x3c0   :  { %v702_v9 = vpop.permute.xlu0 %701 }
 0x3c1   :  { %v712_v12 = vsel %vm136_vm1, %v693_v10, %v702_v9 }
 0x3c2   :  { %v714_v16 = vsel %vm713_vm6, %v712_v12, %v706_v11 }
 0x3c3   :  { %v716_v17 = vsel %vm715_vm7, %v714_v16, %v710_v38 }
 0x3c4   :  { %v717_v20 = vadd.f32 %v716_v17, %v1803_v0 }
 0x3c6   :  { %v718_v21 = vsel %vm43_vm0, %v717_v20, 0.0 }
 0x3c7   :  { %719 = vadd.xlane.f32.xlu1 %v718_v21 }
 0x3cf   :  { %883 = vmax.xlane.f32.xlu1 %v882_v23 }
 0x3e9   :  { %v875_v25 = vpop.xlane.xlu2 %874 }
 0x3ea   :  { %v885_v26 = vsub.f32 %v837_v18, %v875_v25 }
 0x3eb   :  { %v878_v27 = vpop.xlane.xlu0 %877 }
 0x3ec   :  { %v889_v29 = vmul.f32 1.442695, %v885_v26  ;;  %v886_v31 = vsub.f32 %v840_v24, %v878_v27 }
 0x3ee   :  { %1664 = vpow2.f32 %v889_v29  ;;  %v891_v32 = vmul.f32 1.442695, %v886_v31 }
 0x3f0   :  { %1666 = vpow2.f32 %v891_v32 }
 0x3f1   :  { %v881_v28 = vpop.xlane.xlu2 %880 }
 0x3f2   :  { %v887_v33 = vsub.f32 %v843_v7, %v881_v28 }
 0x3f4   :  { %v2011_v35 = vpop.eup %1664  ;;  %v893_v0 = vmul.f32 1.442695, %v887_v33 }
 0x3f5   :  { %v897_v37 = vsel %vm136_vm1, %v2011_v35, 0.0 }
 0x3f6   :  { %v2015_v40 = vpop.eup %1666  ;;  %1668 = vpow2.f32 %v893_v0  ;;  %898 = vadd.xlane.f32.xlu0 %v897_v37  ;;  %v849_v0 = vpop.f32.mrf.mxu1 }
 0x3f7   :  { %v900_v41 = vsel %vm136_vm1, %v2015_v40, 0.0  ;;  %1670 = vrcp.f32 %v1761_v44  ;;  %v861_v44 = vpop.f32.mrf.mxu2 }
 0x3f8   :  { %901 = vadd.xlane.f32.xlu1 %v900_v41 }
 0x3fc   :  { %v2019_v15 = vpop.eup %1668 }
 0x3fd   :  { %v903_v43 = vsel %vm136_vm1, %v2019_v15, 0.0  ;;  %v1671_v46 = vpop.eup %1670 }
 0x3fe   :  { %904 = vadd.xlane.f32.xlu0 %v903_v43  ;;  %v722_v47 = vmul.f32 32.0, %v1671_v46  ;;  %vm726_vm8 = vweird.f32 %v1671_v46  ;;  %v852_v37 = vpop.f32.mrf.mxu1 }
 0x400   :  { %v723_v49 = vsub.f32 1.0, %v722_v47 }
 0x402   :  { %v724_v50 = vmul.f32 %v1671_v46, %v723_v49 }
 0x404   :  { %v725_v42 = vadd.f32 %v1671_v46, %v724_v50 }
 0x406   :  { %v2023_v51 = vsel %vm726_vm8, %v1671_v46, %v725_v42  ;;  %v974_v46 = vsel %vm136_vm1, %v861_v44, -inf }
 0x407   :  { %v975_v47 = vrot.slane %v974_v46, 4 }
 0x43a   :  { %v720_v52 = vpop.xlane.xlu1 %719 }
 0x43b   :  { %v728_v53 = vmul.f32 %v2023_v51, %v720_v52 }
 0x43d   :  { %v2026_v55 = vsub.f32 %v717_v20, %v728_v53 }
 0x43f   :  { %v730_v34 = vmul.f32 %v2026_v55, %v2026_v55 }
 0x441   :  { %v731_v54 = vsel %vm43_vm0, %v730_v34, 0.0  ;;  %v864_v34 = vpop.f32.mrf.mxu2 }
 0x442   :  { %732 = vadd.xlane.f32.xlu2 %v731_v54  ;;  %v884_v57 = vpop.xlane.xlu1 %883 }
 0x443   :  { %v888_v58 = vsub.f32 %v846_v22, %v884_v57 }
 0x445   :  { %v895_v59 = vmul.f32 1.442695, %v888_v58  ;;  %v981_v58 = vsel %vm136_vm1, %v864_v34, -inf }
 0x447   :  { %1672 = vpow2.f32 %v895_v59 }
 0x44d   :  { %v2031_v60 = vpop.eup %1672 }
 0x44e   :  { %v906_v61 = vsel %vm136_vm1, %v2031_v60, 0.0 }
 0x44f   :  { %907 = vadd.xlane.f32.xlu2 %v906_v61  ;;  %v982_v61 = vrot.slane %v981_v58, 4 }
 0x469   :  { %v899_v6 = vpop.xlane.xlu0 %898 }
 0x46a   :  { %1674 = vrcp.f32 %v899_v6  ;;  %v918_v14 = vand.u32 2147483647, %v899_v6  ;;  %v920_v36 = vand.u32 2147483648, %v899_v6  ;;  %vm914_vm10 = vweird.f32 %v899_v6 }
 0x46b   :  { %v902_v1 = vpop.xlane.xlu1 %901 }
 0x46c   :  { %1676 = vrcp.f32 %v902_v1  ;;  %v935_v39 = vand.u32 2147483648, %v902_v1  ;;  %v933_v8 = vand.u32 2147483647, %v902_v1  ;;  %vm919_vm13 = vcmp.eq.f32.partialorder %v918_v14, 8.507059e+37 }
 0x46d   :  { %v921_v10 = vor.u32 1.1754944e-38, %v920_v36  ;;  %vm929_vm14 = vweird.f32 %v902_v1 }
 0x46e   :  { %v936_v17 = vor.u32 1.1754944e-38, %v935_v39  ;;  %vm934_vm2 = vcmp.eq.f32.partialorder %v933_v8, 8.507059e+37 }
 0x470   :  { %v1675_v2 = vpop.eup %1674 }
 0x471   :  { %v910_v3 = vmul.f32 %v1675_v2, %v899_v6  ;;  %v905_v4 = vpop.xlane.xlu0 %904  ;;  %vm915_vm9 = vweird.f32 %v1675_v2 }
 0x472   :  { %v1677_v19 = vpop.eup %1676  ;;  %1678 = vrcp.f32 %v905_v4  ;;  %vm916_vm12 = vmor %vm914_vm10, %vm915_vm9  ;;  %v950_v25 = vand.u32 2147483648, %v905_v4  ;;  %v948_v27 = vand.u32 2147483647, %v905_v4  ;;  %vm944_vm4 = vweird.f32 %v905_v4 }
 0x473   :  { %v911_v30 = vsub.f32 1.0, %v910_v3  ;;  %v925_v13 = vmul.f32 %v1677_v19, %v902_v1  ;;  %vm930_vm11 = vweird.f32 %v1677_v19 }
 0x474   :  { %vm931_vm15 = vmor %vm929_vm14, %vm930_vm11  ;;  %v951_v32 = vor.u32 1.1754944e-38, %v950_v25  ;;  %vm949_vm8 = vcmp.eq.f32.partialorder %v948_v27, 8.507059e+37 }
 0x475   :  { %v912_v18 = vmul.f32 %v1675_v2, %v911_v30  ;;  %v926_v24 = vsub.f32 1.0, %v925_v13  ;;  %v2080_v13 = vld [vmem:[%s2177_s3] ss:$0 sm:$0xff]  ;;  %s1762_s3 = smov [#allocation5]  }
 0x477   :  { %v913_v45 = vadd.f32 %v1675_v2, %v912_v18  ;;  %v927_v7 = vmul.f32 %v1677_v19, %v926_v24  ;;  %v867_v18 = vpop.f32.mrf.mxu2 }
 0x478   :  { %v1679_v9 = vpop.eup %1678 }
 0x479   :  { %v917_v11 = vsel %vm916_vm12, %v1675_v2, %v913_v45  ;;  %v928_v12 = vadd.f32 %v1677_v19, %v927_v7  ;;  %v940_v38 = vmul.f32 %v1679_v9, %v905_v4  ;;  %vm945_vm3 = vweird.f32 %v1679_v9 }
 0x47a   :  { %v922_v16 = vsel %vm919_vm13, %v921_v10, %v917_v11  ;;  %vm946_vm5 = vmor %vm944_vm4, %vm945_vm3  ;;  %v983_v2 = vmax.f32 %v981_v58, %v982_v61  ;;  %v988_v45 = vsel %vm136_vm1, %v867_v18, -inf  ;;  %v2087_v10 = vld [vmem:[%s2178_s4] ss:$0 sm:$0xff]  ;;  %s1540_s4 = sshll.u32 %s1762_s3, 4  ;;  %s1541_s4 = int_to_ptr.vmem [resolvable:$true] %s1540_s4 }
 0x47b   :  { %v932_v20 = vsel %vm931_vm15, %v1677_v19, %v928_v12  ;;  %v941_v21 = vsub.f32 1.0, %v940_v38  ;;  %v923_v22 = vmul.f32 %v2011_v35, %v922_v16  ;;  %v989_v11 = vrot.slane %v988_v45, 4 }
 0x47c   :  { %v937_v23 = vsel %vm934_vm2, %v936_v17, %v932_v20  ;;  %v984_v30 = vrot.slane %v983_v2, 2 }
 0x47d   :  { %v942_v26 = vmul.f32 %v1679_v9, %v941_v21  ;;  %970 = vst.msk [vmem:[#allocation5 + $0x20] sm:$0xff] %vm136_vm1, %v923_v22  ;;  %1603 = vmatpush.xpose.msk.msrb.mxu2 %vm136_vm1, %v923_v22  ;;  %v938_v29 = vmul.f32 %v2015_v40, %v937_v23  ;;  %v990_v21 = vmax.f32 %v988_v45, %v989_v11 }
 0x47e   :  { %v985_v39 = vmax.f32 %v983_v2, %v984_v30 }
 0x47f   :  { %v943_v31 = vadd.f32 %v1679_v9, %v942_v26  ;;  %971 = vst.msk [vmem:[#allocation5 + $0x28] sm:$0xff] %vm136_vm1, %v938_v29  ;;  %v991_v25 = vrot.slane %v990_v21, 2 }
 0x480   :  { %1604 = vmatmul.msk.f32.vlgmr.msrb.gmra.mxu2 %vm136_vm1, %v849_v0  ;;  %v986_v16 = vrot.slane %v985_v39, 1 }
 0x481   :  { %1605 = vmatpush.xpose.msk.msra.mxu2 %vm136_vm1, %v938_v29  ;;  %v947_v28 = vsel %vm946_vm5, %v1679_v9, %v943_v31  ;;  %v855_v9 = vpop.f32.mrf.mxu1 }
 0x482   :  { %v952_v33 = vsel %vm949_vm8, %v951_v32, %v947_v28  ;;  %v987_v22 = vmax.f32 %v985_v39, %v986_v16  ;;  %v992_v32 = vmax.f32 %v990_v21, %v991_v25  ;;  %v870_v28 = vpop.f32.mrf.mxu2 }
 0x483   :  { %v953_v35 = vmul.f32 %v2019_v15, %v952_v33  ;;  %v976_v15 = vmax.f32 %v974_v46, %v975_v47 }
 0x484   :  { %v1003_v27 = vsub.f32 %v864_v34, %v987_v22 }
 0x485   :  { %972 = vst.msk [vmem:[#allocation5 + $0x30] sm:$0xff] %vm136_vm1, %v953_v35  ;;  %1607 = vmatpush.xpose.msk.msrb.mxu3 %vm136_vm1, %v953_v35  ;;  %v977_v50 = vrot.slane %v976_v15, 2 }
 0x486   :  { %v1008_v0 = vmul.f32 1.442695, %v1003_v27 }
 0x487   :  { %v978_v53 = vmax.f32 %v976_v15, %v977_v50 }
 0x488   :  { %1606 = vmatmul.msk.f32.vlgmr.msra.gmra.mxu2 %vm136_vm1, %v852_v37  ;;  %v995_v37 = vsel %vm136_vm1, %v870_v28, -inf }
 0x489   :  { %v979_v57 = vrot.slane %v978_v53, 1  ;;  %v858_v46 = vpop.f32.mrf.mxu1 }
 0x48b   :  { %v980_v6 = vmax.f32 %v978_v53, %v979_v57 }
 0x48d   :  { %v1002_v3 = vsub.f32 %v861_v44, %v980_v6  ;;  %v996_v44 = vrot.slane %v995_v37, 4 }
 0x48f   :  { %v1006_v36 = vmul.f32 1.442695, %v1002_v3 }
 0x4b5   :  { %v733_v40 = vpop.xlane.xlu2 %732 }
 0x4b6   :  { %v734_v41 = vmul.f32 %v733_v40, %v2023_v51 }
 0x4b8   :  { %v735_v43 = vadd.f32 1e-05, %v734_v41 }
 0x4ba   :  { %1680 = vrsqrt.f32 %v735_v43  ;;  %vm742_vm10 = vweird.f32 %v735_v43 }
 0x4c0   :  { %v1681_v49 = vpop.eup %1680 }
 0x4c1   :  { %v737_v42 = vmul.f32 %v1681_v49, %v735_v43  ;;  %vm743_vm9 = vweird.f32 %v1681_v49  ;;  %v993_v43 = vrot.slane %v992_v32, 1 }
 0x4c2   :  { %v908_v52 = vpop.xlane.xlu2 %907  ;;  %vm744_vm11 = vmor %vm742_vm10, %vm743_vm9 }
 0x4c3   :  { %v738_v54 = vmul.f32 %v1681_v49, %v737_v42  ;;  %1682 = vrcp.f32 %v908_v52  ;;  %v963_v12 = vand.u32 2147483647, %v908_v52  ;;  %v965_v38 = vand.u32 2147483648, %v908_v52 }
 0x4c4   :  { %1684 = vpow2.f32 %v1006_v36  ;;  %vm959_vm13 = vweird.f32 %v908_v52  ;;  %v994_v15 = vmax.f32 %v992_v32, %v993_v43 }
 0x4c5   :  { %v739_v59 = vmul.f32 0.5, %v738_v54  ;;  %v966_v26 = vor.u32 1.1754944e-38, %v965_v38  ;;  %vm964_vm15 = vcmp.eq.f32.partialorder %v963_v12, 8.507059e+37  ;;  %1686 = vpow2.f32 %v1008_v0 }
 0x4c6   :  { %v1004_v42 = vsub.f32 %v867_v18, %v994_v15 }
 0x4c7   :  { %v740_v1 = vsub.f32 1.5, %v739_v59 }
 0x4c8   :  { %v1010_v53 = vmul.f32 1.442695, %v1004_v42 }
 0x4c9   :  { %v1683_v4 = vpop.eup %1682  ;;  %v741_v19 = vmul.f32 %v1681_v49, %v740_v1 }
 0x4ca   :  { %v955_v14 = vmul.f32 %v1683_v4, %v908_v52  ;;  %vm960_vm12 = vweird.f32 %v1683_v4  ;;  %v2093_v29 = vpop.eup %1684  ;;  %1688 = vpow2.f32 %v1010_v53 }
 0x4cb   :  { %v745_v24 = vsel %vm744_vm11, %v1681_v49, %v741_v19  ;;  %vm961_vm14 = vmor %vm959_vm13, %vm960_vm12  ;;  %v1014_v35 = vsel %vm136_vm1, %v2093_v29, 0.0  ;;  %v997_v49 = vmax.f32 %v995_v37, %v996_v44  ;;  %v2105_v54 = vpop.eup %1686 }
 0x4cc   :  { %v746_v7 = vmul.f32 %v745_v24, %v2026_v55  ;;  %v956_v8 = vsub.f32 1.0, %v955_v14  ;;  %v1015_v41 = vrot.slane %v1014_v35, 4  ;;  %v1021_v58 = vsel %vm136_vm1, %v2105_v54, 0.0 }
 0x4cd   :  { %v998_v52 = vrot.slane %v997_v49, 2  ;;  %v1022_v61 = vrot.slane %v1021_v58, 4 }
 0x4ce   :  { %v750_v17 = vmul.f32 %v2080_v13, %v746_v7  ;;  %v957_v20 = vmul.f32 %v1683_v4, %v956_v8  ;;  %v1016_v47 = vadd.f32 %v1015_v41, %v1014_v35 }
 0x4cf   :  { %v999_v34 = vmax.f32 %v997_v49, %v998_v52  ;;  %v1023_v2 = vadd.f32 %v1022_v61, %v1021_v58 }
 0x4d0   :  { %v958_v23 = vadd.f32 %v1683_v4, %v957_v20  ;;  %v2091_v55 = vadd.f32 %v2087_v10, %v750_v17  ;;  %v1017_v50 = vrot.slane %v1016_v47, 2  ;;  %v2109_v19 = vpop.eup %1688 }
 0x4d1   :  { %v1000_v59 = vrot.slane %v999_v34, 1  ;;  %v1028_v36 = vsel %vm136_vm1, %v2109_v19, 0.0 }
 0x4d2   :  { %v962_v31 = vsel %vm961_vm14, %v1683_v4, %v958_v23  ;;  %1588 = vmatmul.msk.f32.vlgmr.msra.gmra.mxu3 %vm43_vm0, %v2091_v55  ;;  %v1024_v4 = vrot.slane %v1023_v2, 2  ;;  %v1029_v18 = vrot.slane %v1028_v36, 4 }
 0x4d3   :  { %v967_v33 = vsel %vm964_vm15, %v966_v26, %v962_v31  ;;  %v1001_v1 = vmax.f32 %v999_v34, %v1000_v59 }
 0x4d4   :  { %v968_v40 = vmul.f32 %v2031_v60, %v967_v33  ;;  %v1018_v60 = vadd.f32 %v1017_v50, %v1016_v47  ;;  %v1025_v14 = vadd.f32 %v1024_v4, %v1023_v2  ;;  %v1030_v45 = vadd.f32 %v1029_v18, %v1028_v36 }
 0x4d5   :  { %v1005_v3 = vsub.f32 %v870_v28, %v1001_v1 }
 0x4d6   :  { %973 = vst.msk [vmem:[#allocation5 + $0x38] sm:$0xff] %vm136_vm1, %v968_v40  ;;  %1609 = vmatpush.xpose.msk.msrb.mxu2 %vm136_vm1, %v968_v40  ;;  %v1019_v57 = vrot.slane %v1018_v60, 1  ;;  %v1026_v24 = vrot.slane %v1025_v14, 1 }
 0x4d7   :  { %v1012_v30 = vmul.f32 1.442695, %v1005_v3  ;;  %1548 = dma.vmem_to_hbm [thread:$0]  %s1541_s4, 1024, %s1543_s15, [#allocation6], %s1763_s16, %s1763_s16, %s1760_s25  }
 0x4d8   :  { %v1020_v6 = vadd.f32 %v1019_v57, %v1018_v60  ;;  %v1027_v7 = vadd.f32 %v1026_v24, %v1025_v14 }
 0x4d9   :  { %1610 = vmatmul.msk.f32.vlgmr.msrb.gmra.mxu2 %vm136_vm1, %v858_v46 }
 0x4da   :  { %1608 = vmatmul.msk.f32.vlgmr.msrb.gmra.mxu3 %vm136_vm1, %v855_v9  ;;  %1690 = vrcp.f32 %v1020_v6  ;;  %v1031_v9 = vrot.slane %v1030_v45, 2  ;;  %vm1047_vm2 = vweird.f32 %v1020_v6  ;;  %v1053_v11 = vand.u32 2147483648, %v1020_v6 }
 0x4db   :  { %1692 = vpow2.f32 %v1012_v30  ;;  %v1051_v38 = vand.u32 2147483647, %v1020_v6  ;;  %vm1062_vm8 = vweird.f32 %v1027_v7  ;;  %v1068_v40 = vand.u32 2147483648, %v1027_v7 }
 0x4dc   :  { %1694 = vrcp.f32 %v1027_v7  ;;  %v1032_v17 = vadd.f32 %v1031_v9, %v1030_v45  ;;  %v1054_v25 = vor.u32 1.1754944e-38, %v1053_v11  ;;  %v1066_v44 = vand.u32 2147483647, %v1027_v7 }
 0x4dd   :  { %vm1052_vm5 = vcmp.eq.f32.partialorder %v1051_v38, 8.507059e+37  ;;  %v1069_v15 = vor.u32 1.1754944e-38, %v1068_v40 }
 0x4de   :  { %v1033_v22 = vrot.slane %v1032_v17, 1  ;;  %vm1067_vm11 = vcmp.eq.f32.partialorder %v1066_v44, 8.507059e+37 }
 0x4e0   :  { %v1691_v39 = vpop.eup %1690  ;;  %v1034_v27 = vadd.f32 %v1033_v22, %v1032_v17 }
 0x4e1   :  { %v1043_v8 = vmul.f32 %v1691_v39, %v1020_v6  ;;  %vm1048_vm3 = vweird.f32 %v1691_v39  ;;  %v2113_v16 = vpop.eup %1692 }
 0x4e2   :  { %v1035_v20 = vsel %vm136_vm1, %v2113_v16, 0.0  ;;  %vm1049_vm4 = vmor %vm1047_vm2, %vm1048_vm3  ;;  %v1695_v32 = vpop.eup %1694  ;;  %1696 = vrcp.f32 %v1034_v27  ;;  %vm1077_vm12 = vweird.f32 %v1034_v27  ;;  %v1081_v57 = vand.u32 2147483647, %v1034_v27 }
 0x4e3   :  { %v1044_v12 = vsub.f32 1.0, %v1043_v8  ;;  %v1036_v23 = vrot.slane %v1035_v20, 4  ;;  %v1058_v0 = vmul.f32 %v1695_v32, %v1027_v7  ;;  %vm1063_vm9 = vweird.f32 %v1695_v32 }
 0x4e4   :  { %vm1064_vm10 = vmor %vm1062_vm8, %vm1063_vm9  ;;  %vm1082_vm15 = vcmp.eq.f32.partialorder %v1081_v57, 8.507059e+37 }
 0x4e5   :  { %v1045_v21 = vmul.f32 %v1691_v39, %v1044_v12  ;;  %v1037_v31 = vadd.f32 %v1036_v23, %v1035_v20  ;;  %v1059_v43 = vsub.f32 1.0, %v1058_v0 }
 0x4e7   :  { %v1046_v26 = vadd.f32 %v1691_v39, %v1045_v21  ;;  %v1038_v33 = vrot.slane %v1037_v31, 2  ;;  %v1060_v47 = vmul.f32 %v1695_v32, %v1059_v43 }
 0x4e8   :  { %v1697_v49 = vpop.eup %1696 }
 0x4e9   :  { %v1050_v28 = vsel %vm1049_vm4, %v1691_v39, %v1046_v26  ;;  %v1039_v41 = vadd.f32 %v1038_v33, %v1037_v31  ;;  %v1061_v42 = vadd.f32 %v1695_v32, %v1060_v47  ;;  %v1073_v52 = vmul.f32 %v1697_v49, %v1034_v27 }
 0x4ea   :  { %v1055_v35 = vsel %vm1052_vm5, %v1054_v25, %v1050_v28  ;;  %vm1078_vm13 = vweird.f32 %v1697_v49 }
 0x4eb   :  { %v1056_v37 = vmul.f32 %v2093_v29, %v1055_v35  ;;  %v1040_v46 = vrot.slane %v1039_v41, 1  ;;  %v1065_v60 = vsel %vm1064_vm10, %v1695_v32, %v1061_v42  ;;  %v1083_v29 = vand.u32 2147483648, %v1034_v27  ;;  %vm1079_vm14 = vmor %vm1077_vm12, %vm1078_vm13 }
 0x4ec   :  { %v1070_v53 = vsel %vm1067_vm11, %v1069_v15, %v1065_v60  ;;  %v1074_v34 = vsub.f32 1.0, %v1073_v52 }
 0x4ed   :  { %1224 = vmatpush.msra.mxu3 %v1056_v37  ;;  %v1041_v50 = vadd.f32 %v1040_v46, %v1039_v41  ;;  %v1071_v58 = vmul.f32 %v2105_v54, %v1070_v53  ;;  %v1084_v61 = vor.u32 1.1754944e-38, %v1083_v29 }
 0x4ee   :  { %v1075_v59 = vmul.f32 %v1697_v49, %v1074_v34 }
 0x4ef   :  { %1698 = vrcp.f32 %v1041_v50  ;;  %1247 = vmatpush.msra.mxu2 %v1071_v58  ;;  %vm1092_vm2 = vweird.f32 %v1041_v50  ;;  %v1098_v30 = vand.u32 2147483648, %v1041_v50  ;;  %v1096_v18 = vand.u32 2147483647, %v1041_v50 }
 0x4f0   :  { %v1076_v6 = vadd.f32 %v1697_v49, %v1075_v59 }
 0x4f1   :  { %v1099_v54 = vor.u32 1.1754944e-38, %v1098_v30  ;;  %vm1097_vm5 = vcmp.eq.f32.partialorder %v1096_v18, 8.507059e+37 }
 0x4f2   :  { %v1080_v2 = vsel %vm1079_vm14, %v1697_v49, %v1076_v6 }
 0x4f3   :  { %v1085_v4 = vsel %vm1082_vm15, %v1084_v61, %v1080_v2 }
 0x4f4   :  { %v1086_v14 = vmul.f32 %v2109_v19, %v1085_v4 }
 0x4f5   :  { %v1699_v1 = vpop.eup %1698 }
 0x4f6   :  { %v1088_v3 = vmul.f32 %v1699_v1, %v1041_v50  ;;  %vm1093_vm3 = vweird.f32 %v1699_v1  ;;  %1270 = vmatpush.msrb.mxu3 %v1086_v14 }
 0x4f7   :  { %vm1094_vm4 = vmor %vm1092_vm2, %vm1093_vm3 }
 0x4f8   :  { %v1089_v36 = vsub.f32 1.0, %v1088_v3 }
 0x4fa   :  { %v1090_v24 = vmul.f32 %v1699_v1, %v1089_v36 }
 0x4fc   :  { %v1091_v39 = vadd.f32 %v1699_v1, %v1090_v24 }
 0x4fe   :  { %v1095_v45 = vsel %vm1094_vm4, %v1699_v1, %v1091_v39 }
 0x4ff   :  { %v1100_v7 = vsel %vm1097_vm5, %v1099_v54, %v1095_v45 }
 0x500   :  { %v1101_v8 = vmul.f32 %v2113_v16, %v1100_v7 }
 0x502   :  { %1293 = vmatpush.msrb.mxu2 %v1101_v8 }
 0x503   :  { %v1125_v9 = vpop.f32.mrf.mxu2 }
 0x504   :  { %1611 = vmatmul.msk.f32.vlgmr.msra.gmra.mxu3 %vm136_vm1, %v1125_v9 }
 0x505   :  { %1615 = vmatpush.xpose.msk.msra.mxu3 %vm43_vm0, %v2038_v62 }
 0x509   :  { %1616 = vmatpush.xpose.msk.msra.mxu3 %vm43_vm0, %v2045_v63 }
 0x50b   :  { %v1151_v19 = vpop.f32.mrf.mxu2 }
 0x50c   :  { %1612 = vmatmul.msk.f32.vlgmr.msra.gmra.mxu2 %vm136_vm1, %v1151_v19 }
 0x50d   :  { %1617 = vmatpush.xpose.msk.msra.mxu3 %vm43_vm0, %v2052_v48 }
 0x511   :  { %1618 = vmatpush.xpose.msk.msra.mxu3 %vm43_vm0, %v2059_v56 }
 0x555   :  { %v787_v11 = vpop.f32.mrf.mxu3 }
 0x556   :  { %v788_v26 = vadd.f32 %v787_v11, %v2091_v55 }
 0x558   :  { %v790_v27 = vsel %vm43_vm0, %v788_v26, 0.0 }
 0x55c   :  { %v1203_v12 = vpop.f32.mrf.mxu2 }
 0x55d   :  { %v1177_v38 = vpop.f32.mrf.mxu3  ;;  %1614 = vmatmul.msk.f32.vlgmr.msrb.gmra.mxu2 %vm136_vm1, %v1203_v12 }
 0x55e   :  { %1613 = vmatmul.msk.f32.vlgmr.msrb.gmra.mxu3 %vm136_vm1, %v1177_v38 }
 0x587   :  { %v1226_v62 = vpop.f32.mrf.mxu3 }
 0x588   :  { %1298 = vxpose.xlu1.b32.start.end [1/1] (short) (narrow) %v1226_v62, 8 }
 0x58f   :  { %v1249_v16 = vpop.f32.mrf.mxu2 }
 0x590   :  { %1331 = vxpose.xlu0.b32.start.end [1/1] (short) (narrow) %v1249_v16, 8 }
 0x5e0   :  { %v1295_v63 = vpop.f32.mrf.mxu2 }
 0x5e1   :  { %1397 = vxpose.xlu0.b32.start.end [1/1] (short) (narrow) %v1295_v63, 8  ;;  %v1272_v17 = vpop.f32.mrf.mxu3 }
 0x5e2   :  { %1364 = vxpose.xlu2.b32.start.end [1/1] (short) (narrow) %v1272_v17, 8 }
 0x62c   :  { %v1314_v48 = vpop.trf.xlu1 }
 0x62d   :  { %1330 = vst.msk [vmem:[#allocation2] sm:$0xff] %vm136_vm1, %v1314_v48 }
 0x634   :  { %v1347_v20 = vpop.trf.xlu0 }
 0x635   :  { %1363 = vst.msk [vmem:[#allocation2 + $0x8] sm:$0xff] %vm136_vm1, %v1347_v20 }
 0x67b   :  { %v1380_v56 = vpop.trf.xlu2 }
 0x67c   :  { %1396 = vst.msk [vmem:[#allocation2 + $0x10] sm:$0xff] %vm136_vm1, %v1380_v56 }
 0x685   :  { %v1413_v21 = vpop.trf.xlu0 }
 0x686   :  { %1429 = vst.msk [vmem:[#allocation2 + $0x18] sm:$0xff] %vm136_vm1, %v1413_v21 }
 0x68d   :  { %v1433_v22 = vld [vmem:[#allocation2 + $0x3] ss:$4 sm:$0xff]  ;;  %v1432_v23 = vld [vmem:[#allocation2 + $0x2] ss:$4 sm:$0xff]  ;;  %v1431_v25 = vld [vmem:[#allocation2 + $0x1] ss:$4 sm:$0xff] }
 0x68e   :  { %1443 = vrot.lane.b32.xlu1 %v1433_v22, %s1758_s0  ;;  %1439 = vrot.lane.b32.xlu0 %v1432_v23, %s1759_s24  ;;  %v1430_v32 = vld [vmem:[#allocation2] ss:$4 sm:$0xff] }
 0x68f   :  { %1435 = vrot.lane.b32.xlu2 %v1431_v25, %s1760_s25 }
 0x6b8   :  { %791 = vadd.xlane.f32.xlu0 %v790_v27 }
 0x6e9   :  { %v1436_v31 = vpop.permute.xlu2 %1435 }
 0x6ea   :  { %v1446_v28 = vsel %vm136_vm1, %v1430_v32, %v1436_v31 }
 0x700   :  { %v1444_v33 = vpop.permute.xlu1 %1443  ;;  %v1440_v35 = vpop.permute.xlu0 %1439 }
 0x701   :  { %v1447_v0 = vsel %vm713_vm6, %v1446_v28, %v1440_v35 }
 0x702   :  { %v1448_v37 = vsel %vm715_vm7, %v1447_v0, %v1444_v33 }
 0x703   :  { %v1449_v40 = vadd.f32 %v1965_v5, %v1448_v37 }
 0x705   :  { %v1450_v41 = vsel %vm43_vm0, %v1449_v40, 0.0 }
 0x706   :  { %1451 = vadd.xlane.f32.xlu1 %v1450_v41 }
 0x72b   :  { %v792_v43 = vpop.xlane.xlu0 %791 }
 0x72c   :  { %v793_v46 = vmul.f32 %v792_v43, %v2023_v51 }
 0x72e   :  { %v794_v49 = vsub.f32 %v788_v26, %v793_v46 }
 0x730   :  { %v795_v42 = vmul.f32 %v794_v49, %v794_v49 }
 0x732   :  { %v796_v52 = vsel %vm43_vm0, %v795_v42, 0.0 }
 0x779   :  { %v1452_v55 = vpop.xlane.xlu1 %1451 }
 0x77a   :  { %v1453_v44 = vmul.f32 %v1452_v55, %v2023_v51 }
 0x77c   :  { %v1454_v47 = vsub.f32 %v1449_v40, %v1453_v44 }
 0x77e   :  { %v1455_v15 = vmul.f32 %v1454_v47, %v1454_v47 }
 0x780   :  { %v1456_v50 = vsel %vm43_vm0, %v1455_v15, 0.0 }
 0x781   :  { %1457 = vadd.xlane.f32.xlu2 %v1456_v50 }
 0x789   :  { %797 = vadd.xlane.f32.xlu2 %v796_v52 }
 0x7f4   :  { %v1458_v5 = vpop.xlane.xlu2 %1457 }
 0x7f5   :  { %v1459_v60 = vmul.f32 %v1458_v5, %v2023_v51 }
 0x7f7   :  { %v1460_v29 = vadd.f32 1e-05, %v1459_v60 }
 0x7f9   :  { %1700 = vrsqrt.f32 %v1460_v29  ;;  %vm1467_vm6 = vweird.f32 %v1460_v29 }
 0x7fc   :  { %v798_v53 = vpop.xlane.xlu2 %797 }
 0x7fd   :  { %v799_v34 = vmul.f32 %v798_v53, %v2023_v51 }
 0x7ff   :  { %v1701_v57 = vpop.eup %1700  ;;  %v800_v58 = vadd.f32 1e-05, %v799_v34 }
 0x800   :  { %v1462_v59 = vmul.f32 %v1701_v57, %v1460_v29  ;;  %vm1468_vm1 = vweird.f32 %v1701_v57 }
 0x801   :  { %1702 = vrsqrt.f32 %v800_v58  ;;  %vm1469_vm7 = vmor %vm1467_vm6, %vm1468_vm1  ;;  %vm807_vm9 = vweird.f32 %v800_v58 }
 0x802   :  { %v1463_v61 = vmul.f32 %v1701_v57, %v1462_v59 }
 0x804   :  { %v1464_v6 = vmul.f32 0.5, %v1463_v61 }
 0x806   :  { %v1465_v1 = vsub.f32 1.5, %v1464_v6 }
 0x807   :  { %v1703_v2 = vpop.eup %1702 }
 0x808   :  { %v1466_v3 = vmul.f32 %v1701_v57, %v1465_v1  ;;  %v802_v4 = vmul.f32 %v1703_v2, %v800_v58  ;;  %vm808_vm8 = vweird.f32 %v1703_v2 }
 0x809   :  { %vm809_vm10 = vmor %vm807_vm9, %vm808_vm8 }
 0x80a   :  { %v1470_v30 = vsel %vm1469_vm7, %v1701_v57, %v1466_v3  ;;  %v803_v14 = vmul.f32 %v1703_v2, %v802_v4 }
 0x80b   :  { %v1471_v36 = vmul.f32 %v1470_v30, %v1454_v47 }
 0x80c   :  { %v804_v18 = vmul.f32 0.5, %v803_v14 }
 0x80d   :  { %v1472_v24 = vmul.f32 %v2080_v13, %v1471_v36 }
 0x80e   :  { %v805_v54 = vsub.f32 1.5, %v804_v18 }
 0x80f   :  { %v1473_v39 = vadd.f32 %v2087_v10, %v1472_v24 }
 0x810   :  { %v806_v45 = vmul.f32 %v1703_v2, %v805_v54 }
 0x811   :  { %1619 = vmatmul.msk.f32.vlgmr.msra.gmra.mxu3 %vm43_vm0, %v1473_v39 }
 0x812   :  { %v810_v7 = vsel %vm809_vm10, %v1703_v2, %v806_v45 }
 0x813   :  { %v811_v8 = vmul.f32 %v810_v7, %v794_v49 }
 0x815   :  { %v812_v9 = vmul.f32 %v2080_v13, %v811_v8 }
 0x817   :  { %v813_v19 = vadd.f32 %v2087_v10, %v812_v9 }
 0x819   :  { %814 = vst.msk [vmem:[#allocation3] sm:$0xff] %vm43_vm0, %v813_v19 }
 0x894   :  { %v1494_v11 = vpop.f32.mrf.mxu3 }
 0x895   :  { %v1495_v12 = vadd.f32 %v1494_v11, %v1473_v39 }
 0x897   :  { %v1497_v38 = vsel %vm43_vm0, %v1495_v12, 0.0 }
 0x898   :  { %1498 = vadd.xlane.f32.xlu1 %v1497_v38 }
 0x90b   :  { %v1499_v62 = vpop.xlane.xlu1 %1498 }
 0x90c   :  { %v1500_v16 = vmul.f32 %v1499_v62, %v2023_v51 }
 0x90e   :  { %v1501_v63 = vsub.f32 %v1495_v12, %v1500_v16 }
 0x910   :  { %v1502_v17 = vmul.f32 %v1501_v63, %v1501_v63 }
 0x912   :  { %v1503_v20 = vsel %vm43_vm0, %v1502_v17, 0.0 }
 0x913   :  { %1504 = vadd.xlane.f32.xlu1 %v1503_v20 }
 0x986   :  { %v1505_v48 = vpop.xlane.xlu1 %1504 }
 0x987   :  { %v1506_v56 = vmul.f32 %v1505_v48, %v2023_v51 }
 0x989   :  { %v1507_v21 = vadd.f32 1e-05, %v1506_v56 }
 0x98b   :  { %1704 = vrsqrt.f32 %v1507_v21  ;;  %vm1514_vm12 = vweird.f32 %v1507_v21 }
 0x991   :  { %v1705_v22 = vpop.eup %1704 }
 0x992   :  { %v1509_v23 = vmul.f32 %v1705_v22, %v1507_v21  ;;  %vm1515_vm11 = vweird.f32 %v1705_v22 }
 0x993   :  { %vm1516_vm13 = vmor %vm1514_vm12, %vm1515_vm11 }
 0x994   :  { %v1510_v25 = vmul.f32 %v1705_v22, %v1509_v23 }
 0x996   :  { %v1511_v26 = vmul.f32 0.5, %v1510_v25 }
 0x998   :  { %v1512_v27 = vsub.f32 1.5, %v1511_v26 }
 0x99a   :  { %v1513_v31 = vmul.f32 %v1705_v22, %v1512_v27 }
 0x99c   :  { %v1517_v32 = vsel %vm1516_vm13, %v1705_v22, %v1513_v31 }
 0x99d   :  { %v1518_v28 = vmul.f32 %v1517_v32, %v1501_v63 }
 0x99f   :  { %v1519_v51 = vmul.f32 %v2080_v13, %v1518_v28 }
 0x9a1   :  { %v1520_v33 = vadd.f32 %v2087_v10, %v1519_v51 }
 0x9a3   :  { %1522 = vst.msk [vmem:[#allocation3 + $0x8] sm:$0xff] %vm43_vm0, %v1520_v33 }
 0x9a4   :  { %1535 = dma.vmem_to_hbm [thread:$0]  %s1528_s17, 256, %s1530_s20, [#allocation4], %s1763_s16, %s1763_s16, %s1760_s25  }
 0x9a5   :  { %1754 = dma.done.wait [#allocation4], 256  }
 0x9a6   :  { %1755 = vsyncadd [#allocation4], 4294967040 }
 0x9a7   :  { %1756 = dma.done.wait [#allocation6], 1024  }
 0x9a8   :  { %1757 = vsyncadd [#allocation6], 4294966272 }
 0x9a9   :  { %1557 = vsyncpa [#allocation4], 1 }
 0x9aa   :  { %1558 = vsyncpa [#allocation6], 1 }

</bundles_post_ra>
